<compile_context>
chip_gen: v7x
topology: tpu7x:2x2x1
jax: 0.10.0
libtpu: 0.0.40
codegen_flags: <defaults>
</compile_context>

<pallas_src>
import functools

import jax
import jax.numpy as jnp
from jax import lax
from jax.experimental import pallas as pl
from jax.experimental.pallas import tpu as pltpu


def _forward_shift_kernel(band_lo_ref, band_hi_ref,          # scalar prefetch (SMEM)
                          src_ref, q_ref,                     # inputs  (VMEM)
                          img_ref, mask_ref,                  # outputs (VMEM)
                          acc_ref,                            # scratch (VMEM f32)
                          *, C, W, TH, n_tar,
                          kernel_radius, kernel_sigma2, dot_dtype):
    b = pl.program_id(0)
    j = pl.program_id(1)          # target row-tile index
    k = pl.program_id(2)          # source row-tile index (reduction axis)
    n_src = pl.num_programs(2)

    # Zero the (C+1, TT) accumulator at the start of every (b, j) reduction.
    @pl.when(k == 0)
    def _init():
        acc_ref[...] = jnp.zeros_like(acc_ref)

    lo = band_lo_ref[b * n_tar + j]
    hi = band_hi_ref[b * n_tar + j]

    # Only source row-blocks whose warped rows can land in this target row-tile
    # contribute; everything else is provably zero weight and is skipped.
    @pl.when(jnp.logical_and(k >= lo, k < hi))
    def _accumulate():
        inv_two_sigma2 = 1.0 / (2.0 * kernel_sigma2)

        q = q_ref[0]                           # (TS, 2) f32 : [qx, qy] per src pixel
        qx = q[:, 0:1]                         # (TS, 1)
        qy = q[:, 1:2]                         # (TS, 1)

        # Target coords of this tile: columns 0..W-1, rows j*TH .. j*TH+TH-1.
        tx = lax.broadcasted_iota(jnp.int32, (1, W), 1).astype(jnp.float32)
        ty = (lax.broadcasted_iota(jnp.int32, (1, TH), 1) + j * TH).astype(jnp.float32)

        # Separable Gaussian + box window in f32: O(TS*(W+TH)) transcendentals.
        # TODO(synk): exact CUDA weight/window formula of Flow_forward_shift is not
        # available; using a square window of half-width kernel_radius around the
        # continuous warped position and exp(-d^2/(2*sigma^2)).
        dx = tx - qx                           # (TS, W)
        dy = ty - qy                           # (TS, TH)
        wx = jnp.where(jnp.abs(dx) <= kernel_radius,
                       jnp.exp(-(dx * dx) * inv_two_sigma2), 0.0)
        wy = jnp.where(jnp.abs(dy) <= kernel_radius,
                       jnp.exp(-(dy * dy) * inv_two_sigma2), 0.0)

        src = src_ref[0]                       # (C+1, TS), dot_dtype (ones row last)

        # Fused per-target-row expansion (no selector matmuls, no (TS,TT) temps):
        #   acc[:, h*W:(h+1)*W] += src @ (wx * wy[:, h])
        if W % 128 == 0:
            # Lane-aligned accumulator slices -> direct read-modify-write.
            for h in range(TH):
                wsub = (wx * wy[:, h:h + 1]).astype(dot_dtype)          # (TS, W)
                acc_ref[:, h * W:(h + 1) * W] += jnp.dot(
                    src, wsub, preferred_element_type=jnp.float32)      # (C+1, W)
        else:
            # Unaligned W: concatenate the TH per-row results along lanes and do
            # a single aligned (C+1, TT) accumulate.
            parts = []
            for h in range(TH):
                wsub = (wx * wy[:, h:h + 1]).astype(dot_dtype)          # (TS, W)
                parts.append(jnp.dot(src, wsub,
                                     preferred_element_type=jnp.float32))
            acc_ref[...] += jnp.concatenate(parts, axis=1)              # (C+1, TT)

    @pl.when(k == n_src - 1)
    def _finalize():
        acc = acc_ref[...]
        w_sum = acc[C:C + 1, :]                                   # (1, TT)
        inv = pl.reciprocal(w_sum + 1e-8, approx=True)            # EUP, ~free
        img_ref[0] = (acc[:C, :] * inv).astype(img_ref.dtype)
        mask_ref[0] = (w_sum > 0.0).astype(mask_ref.dtype)


def _pick_tile_rows(H, W, requested, target_elems, prefer_even_count=False):
    """Row-block size r: r divides H and r*W is a multiple of 128 (or r == H).

    Among fitting candidates prefer (1) an even number of tiles when requested
    (megacore load balance when B == 1), (2) 256-aligned r*W (v6e/v7x MXU),
    (3) the largest tile.
    """
    legal = [r for r in range(1, H + 1)
             if H % r == 0 and ((r * W) % 128 == 0 or r == H)]
    if requested is not None:
        r = int(requested)
        if r not in legal:
            raise ValueError(
                f"tile rows {r} invalid for H={H}, W={W}; legal choices: {legal}")
        return r
    fitting = [r for r in legal if r * W <= target_elems] or [min(legal)]

    def score(r):
        return (1 if (prefer_even_count and (H // r) % 2 == 0) else 0,
                1 if (r * W) % 256 == 0 else 0,
                r * W)

    return max(fitting, key=score)


def forward_shift(src_image, flow_src_to_tar, *,
                  kernel_radius=4, kernel_sigma2=0.5,
                  src_tile_rows=None, tar_tile_rows=None,
                  mxu_dtype=jnp.bfloat16):
    """src_image: (B,C,H,W) f32, flow_src_to_tar: (B,2,H,W) f32 -> (image, mask)."""
    B, C, H, W = src_image.shape
    HW = H * W
    r = float(kernel_radius)

    # Tile sizes (rows of the image; the full width stays lane-dense).
    # After the fused-weight change the per-step VMEM footprint is tiny, so the
    # defaults target larger tiles: TS ~ 2048 elems (bigger matmul K, fewer acc
    # RMWs), TT ~ 4096 elems (less src/q re-read across target tiles, larger
    # lane-dense output stores).  Pass mxu_dtype=jnp.float32 for an f32 MXU path.
    SH = _pick_tile_rows(H, W, src_tile_rows, target_elems=2048)
    TH = _pick_tile_rows(H, W, tar_tile_rows, target_elems=4096,
                         prefer_even_count=(B == 1))
    TS, TT = SH * W, TH * W
    n_src, n_tar = H // SH, H // TH

    # ---- plain-JAX (XLA) preprocessing -------------------------------------
    flow = flow_src_to_tar.astype(jnp.float32)
    qx = flow[:, 0] + jnp.arange(W, dtype=jnp.float32)[None, None, :]   # (B,H,W)
    qy = flow[:, 1] + jnp.arange(H, dtype=jnp.float32)[None, :, None]   # (B,H,W)
    # Warped coordinates in (B, HW, 2) layout -> qx/qy are (TS,1) columns in
    # the kernel with no in-kernel transpose.
    q = jnp.stack([qx, qy], axis=-1).reshape(B, HW, 2)

    # Source image + ones row (weight-sum folded into the matmul).
    src_flat = src_image.reshape(B, C, HW).astype(jnp.float32)
    src_aug = jnp.concatenate(
        [src_flat, jnp.ones((B, 1, HW), jnp.float32)], axis=1).astype(mxu_dtype)

    # Conservative per-(batch, target-tile) band of contributing source blocks.
    qy_blk = qy.reshape(B, n_src, SH * W)
    qy_min = qy_blk.min(axis=2)                                  # (B, n_src)
    qy_max = qy_blk.max(axis=2)
    j_arr = jnp.arange(n_tar, dtype=jnp.float32)
    lo_bound = j_arr * TH - r                                    # (n_tar,)
    hi_bound = (j_arr + 1.0) * TH - 1.0 + r
    contrib = ((qy_max[:, None, :] >= lo_bound[None, :, None]) &
               (qy_min[:, None, :] <= hi_bound[None, :, None]))  # (B, n_tar, n_src)
    k_arr = jnp.arange(n_src, dtype=jnp.int32)
    band_lo = jnp.min(jnp.where(contrib, k_arr[None, None, :], n_src), axis=2)
    band_hi = jnp.max(jnp.where(contrib, k_arr[None, None, :] + 1, 0), axis=2)
    band_lo = jnp.minimum(band_lo, n_src - 1).astype(jnp.int32).reshape(-1)
    band_hi = band_hi.astype(jnp.int32).reshape(-1)              # (B * n_tar,)

    # ---- Pallas call ---------------------------------------------------------
    def banded_k(k, lo_ref, hi_ref, b, j):
        lo = lo_ref[b * n_tar + j]
        hi = hi_ref[b * n_tar + j]
        # Out-of-band steps repeat the previous block index -> their DMA is elided.
        return jnp.minimum(jnp.maximum(k, lo), jnp.maximum(hi - 1, lo))

    src_spec = pl.BlockSpec((1, C + 1, TS),
                            lambda b, j, k, lo, hi: (b, 0, banded_k(k, lo, hi, b, j)))
    q_spec = pl.BlockSpec((1, TS, 2),
                          lambda b, j, k, lo, hi: (b, banded_k(k, lo, hi, b, j), 0))
    img_spec = pl.BlockSpec((1, C, TT), lambda b, j, k, lo, hi: (b, 0, j))
    mask_spec = pl.BlockSpec((1, 1, TT), lambda b, j, k, lo, hi: (b, 0, j))

    kernel = functools.partial(
        _forward_shift_kernel,
        C=C, W=W, TH=TH, n_tar=n_tar,
        kernel_radius=r, kernel_sigma2=float(kernel_sigma2),
        dot_dtype=mxu_dtype)

    # Generation-aware scoped-VMEM budget: ~32 MiB on v7x (64 MiB physical),
    # 56 MiB on v5e/v6e (128 MiB physical).
    try:
        vmem_cap = int(pltpu.get_tpu_info().vmem_capacity_bytes)
    except Exception:
        vmem_cap = 64 * 1024 * 1024
    vmem_limit = (56 if vmem_cap >= (96 << 20) else 32) * 1024 * 1024

    # Advisory cost estimate (static approximation of the band coverage).
    band_frac = min(1.0, (TH + SH + 2.0 * r) / H)
    itemsize = jnp.dtype(mxu_dtype).itemsize
    cost = pl.CostEstimate(
        flops=int(2 * (C + 1) * HW * HW * B * band_frac),
        transcendentals=int(B * n_tar * band_frac * HW * (W + TH)),
        bytes_accessed=int(B * n_tar * band_frac * HW * ((C + 1) * itemsize + 8)
                           + B * (C + 2) * HW * 4),
    )

    img_flat, mask_flat = pl.pallas_call(
        kernel,
        out_shape=(
            jax.ShapeDtypeStruct((B, C, HW), jnp.float32),
            jax.ShapeDtypeStruct((B, 1, HW), jnp.float32),
        ),
        grid_spec=pltpu.PrefetchScalarGridSpec(
            num_scalar_prefetch=2,
            grid=(B, n_tar, n_src),
            in_specs=[src_spec, q_spec],
            out_specs=[img_spec, mask_spec],
            scratch_shapes=[pltpu.VMEM((C + 1, TT), jnp.float32)],
        ),
        compiler_params=pltpu.CompilerParams(
            # batch & target-tile axes parallel (shards over v7x's 2 TCs; needs
            # B*n_tar >= 2 for load balance), source/reduction axis arbitrary.
            dimension_semantics=("parallel", "parallel", "arbitrary"),
            vmem_limit_bytes=vmem_limit,
        ),
        cost_estimate=cost,
    )(band_lo, band_hi, src_aug, q)

    return img_flat.reshape(B, C, H, W), mask_flat.reshape(B, 1, H, W)


if __name__ == "__main__":
    B, C, H, W = 2, 4, 16, 16
    key = jax.random.PRNGKey(0)
    k_img, k_flow = jax.random.split(key)

    src_image = jax.random.uniform(k_img, (B, C, H, W), dtype=jnp.float32)
    # Small flows so most splats land inside the frame.
    flow_src_to_tar = 3.0 * jax.random.normal(k_flow, (B, 2, H, W), dtype=jnp.float32)

    # Small explicit tiles so the demo exercises the tiled / banded reduction path.
    image, mask = forward_shift(src_image, flow_src_to_tar,
                                kernel_radius=4, kernel_sigma2=0.5,
                                src_tile_rows=8, tar_tile_rows=8)
    jax.block_until_ready((image, mask))

    assert image.shape == (B, C, H, W) and image.dtype == jnp.float32
    assert mask.shape == (B, 1, H, W) and mask.dtype == jnp.float32
    assert bool(jnp.isfinite(image).all())
    assert bool(jnp.isfinite(mask).all())

    print("KERNEL_OK")
</pallas_src>

<mosaic_0001>
module attributes {stable_mosaic.version = 11 : i64} {
  func.func @_forward_shift_kernel(%arg0: i32, %arg1: i32, %arg2: i32, %arg3: memref<4xi32, #tpu.memory_space<smem>>, %arg4: memref<4xi32, #tpu.memory_space<smem>>, %arg5: memref<1x5x128xbf16, #tpu.memory_space<vmem>>, %arg6: memref<1x128x2xf32, #tpu.memory_space<vmem>>, %arg7: memref<1x4x128xf32, #tpu.memory_space<vmem>>, %arg8: memref<1x1x128xf32, #tpu.memory_space<vmem>>, %arg9: memref<5x128xf32, #tpu.memory_space<vmem>>) attributes {dimension_semantics = [#tpu.dimension_semantics<parallel>, #tpu.dimension_semantics<parallel>, #tpu.dimension_semantics<arbitrary>], iteration_bounds = array<i64: 2, 2, 2>, scalar_prefetch = 2 : i64, scratch_operands = 1 : i64, tpu.core_type = #tpu.core_type<tc>, window_params = [{transform_indices = @transform_0, window_bounds = array<i64: 1, 5, 128>}, {transform_indices = @transform_1, window_bounds = array<i64: 1, 128, 2>}, {transform_indices = @transform_2, window_bounds = array<i64: 1, 4, 128>}, {transform_indices = @transform_3, window_bounds = array<i64: 1, 1, 128>}]} {
    %c0_i32 = arith.constant 0 : i32
    %0 = arith.cmpi eq, %arg2, %c0_i32 : i32
    %1 = arith.extui %0 : i1 to i32
    %c0_i32_0 = arith.constant 0 : i32
    %2 = arith.cmpi ne, %1, %c0_i32_0 : i32
    scf.if %2 {
      %cst = arith.constant 0.000000e+00 : f32
      %19 = vector.broadcast %cst : f32 to vector<5x128xf32>
      %c0 = arith.constant 0 : index
      %c0_4 = arith.constant 0 : index
      %20 = vector.load %arg9[%c0, %c0_4] : memref<5x128xf32, #tpu.memory_space<vmem>>, vector<5x128xf32>
      tpu.vector_store %arg9[%c0, %c0_4], %19 {strides = array<i32>} : memref<5x128xf32, #tpu.memory_space<vmem>>, vector<5x128xf32>,
    } else {
    }
    %c2_i32 = arith.constant 2 : i32
    %3 = arith.muli %arg0, %c2_i32 : i32
    %4 = arith.addi %3, %arg1 : i32
    %5 = arith.index_cast %4 : i32 to index
    %6 = memref.load %arg3[%5] : memref<4xi32, #tpu.memory_space<smem>>
    %c2_i32_1 = arith.constant 2 : i32
    %7 = arith.muli %arg0, %c2_i32_1 : i32
    %8 = arith.addi %7, %arg1 : i32
    %9 = arith.index_cast %8 : i32 to index
    %10 = memref.load %arg4[%9] : memref<4xi32, #tpu.memory_space<smem>>
    %11 = arith.cmpi sge, %arg2, %6 : i32
    %12 = arith.cmpi slt, %arg2, %10 : i32
    %13 = arith.andi %11, %12 : i1
    %14 = arith.extui %13 : i1 to i32
    %c0_i32_2 = arith.constant 0 : i32
    %15 = arith.cmpi ne, %14, %c0_i32_2 : i32
    scf.if %15 {
      %c0 = arith.constant 0 : index
      %c0_4 = arith.constant 0 : index
      %c0_5 = arith.constant 0 : index
      %19 = vector.load %arg6[%c0, %c0_4, %c0_5] : memref<1x128x2xf32, #tpu.memory_space<vmem>>, vector<1x128x2xf32>
      %20 = vector.shape_cast %19 : vector<1x128x2xf32> to vector<128x2xf32>
      %21 = vector.extract_strided_slice %20 {offsets = [0, 0], sizes = [128, 1], strides = [1, 1]} : vector<128x2xf32> to vector<128x1xf32>
      %22 = vector.extract_strided_slice %20 {offsets = [0, 1], sizes = [128, 1], strides = [1, 1]} : vector<128x2xf32> to vector<128x1xf32>
      %23 = tpu.iota {dimensions = array<i32: 1>} : vector<1x16xi32>
      %24 = arith.sitofp %23 : vector<1x16xi32> to vector<1x16xf32>
      %25 = tpu.iota {dimensions = array<i32: 1>} : vector<1x8xi32>
      %c8_i32 = arith.constant 8 : i32
      %26 = arith.muli %arg1, %c8_i32 : i32
      %27 = vector.broadcast %26 : i32 to vector<1x8xi32>
      %28 = arith.addi %25, %27 : vector<1x8xi32>
      %29 = arith.sitofp %28 : vector<1x8xi32> to vector<1x8xf32>
      %30 = vector.broadcast %24 : vector<1x16xf32> to vector<128x16xf32>
      %31 = vector.broadcast %21 : vector<128x1xf32> to vector<128x16xf32>
      %32 = arith.subf %30, %31 : vector<128x16xf32>
      %33 = vector.broadcast %29 : vector<1x8xf32> to vector<128x8xf32>
      %34 = vector.broadcast %22 : vector<128x1xf32> to vector<128x8xf32>
      %35 = arith.subf %33, %34 : vector<128x8xf32>
      %36 = math.absf %32 : vector<128x16xf32>
      %cst = arith.constant 4.000000e+00 : f32
      %37 = vector.broadcast %cst : f32 to vector<128x16xf32>
      %38 = arith.cmpf ole, %36, %37 : vector<128x16xf32>
      %39 = arith.mulf %32, %32 : vector<128x16xf32>
      %cst_6 = arith.constant 0.000000e+00 : f32
      %40 = vector.broadcast %cst_6 : f32 to vector<128x16xf32>
      %41 = arith.subf %40, %39 : vector<128x16xf32>
      %cst_7 = arith.constant 1.000000e+00 : f32
      %42 = vector.broadcast %cst_7 : f32 to vector<128x16xf32>
      %43 = arith.mulf %41, %42 : vector<128x16xf32>
      %44 = math.exp %43 : vector<128x16xf32>
      %cst_8 = arith.constant 0.000000e+00 : f32
      %45 = vector.broadcast %cst_8 : f32 to vector<128x16xf32>
      %46 = arith.select %38, %44, %45 : vector<128x16xi1>, vector<128x16xf32>
      %47 = math.absf %35 : vector<128x8xf32>
      %cst_9 = arith.constant 4.000000e+00 : f32
      %48 = vector.broadcast %cst_9 : f32 to vector<128x8xf32>
      %49 = arith.cmpf ole, %47, %48 : vector<128x8xf32>
      %50 = arith.mulf %35, %35 : vector<128x8xf32>
      %cst_10 = arith.constant 0.000000e+00 : f32
      %51 = vector.broadcast %cst_10 : f32 to vector<128x8xf32>
      %52 = arith.subf %51, %50 : vector<128x8xf32>
      %cst_11 = arith.constant 1.000000e+00 : f32
      %53 = vector.broadcast %cst_11 : f32 to vector<128x8xf32>
      %54 = arith.mulf %52, %53 : vector<128x8xf32>
      %55 = math.exp %54 : vector<128x8xf32>
      %cst_12 = arith.constant 0.000000e+00 : f32
      %56 = vector.broadcast %cst_12 : f32 to vector<128x8xf32>
      %57 = arith.select %49, %55, %56 : vector<128x8xi1>, vector<128x8xf32>
      %c0_13 = arith.constant 0 : index
      %c0_14 = arith.constant 0 : index
      %c0_15 = arith.constant 0 : index
      %58 = vector.load %arg5[%c0_13, %c0_14, %c0_15] : memref<1x5x128xbf16, #tpu.memory_space<vmem>>, vector<1x5x128xbf16>
      %59 = vector.shape_cast %58 : vector<1x5x128xbf16> to vector<5x128xbf16>
      %60 = vector.extract_strided_slice %57 {offsets = [0, 0], sizes = [128, 1], strides = [1, 1]} : vector<128x8xf32> to vector<128x1xf32>
      %61 = vector.broadcast %60 : vector<128x1xf32> to vector<128x16xf32>
      %62 = arith.mulf %46, %61 : vector<128x16xf32>
      %63 = arith.truncf %62 : vector<128x16xf32> to vector<128x16xbf16>
      %cst_16 = arith.constant dense<0.000000e+00> : vector<5x16xf32>
      %64 = tpu.matmul %59, %63, %cst_16 {dimension_numbers = #tpu.dot_dimension_numbers<[1], [0], [0], [1], [0, 0, 1, 1], [], []>} : vector<5x128xbf16>, vector<128x16xbf16>, vector<5x16xf32> -> vector<5x16xf32>
      %65 = vector.extract_strided_slice %57 {offsets = [0, 1], sizes = [128, 1], strides = [1, 1]} : vector<128x8xf32> to vector<128x1xf32>
      %66 = vector.broadcast %65 : vector<128x1xf32> to vector<128x16xf32>
      %67 = arith.mulf %46, %66 : vector<128x16xf32>
      %68 = arith.truncf %67 : vector<128x16xf32> to vector<128x16xbf16>
      %cst_17 = arith.constant dense<0.000000e+00> : vector<5x16xf32>
      %69 = tpu.matmul %59, %68, %cst_17 {dimension_numbers = #tpu.dot_dimension_numbers<[1], [0], [0], [1], [0, 0, 1, 1], [], []>} : vector<5x128xbf16>, vector<128x16xbf16>, vector<5x16xf32> -> vector<5x16xf32>
      %70 = vector.extract_strided_slice %57 {offsets = [0, 2], sizes = [128, 1], strides = [1, 1]} : vector<128x8xf32> to vector<128x1xf32>
      %71 = vector.broadcast %70 : vector<128x1xf32> to vector<128x16xf32>
      %72 = arith.mulf %46, %71 : vector<128x16xf32>
      %73 = arith.truncf %72 : vector<128x16xf32> to vector<128x16xbf16>
      %cst_18 = arith.constant dense<0.000000e+00> : vector<5x16xf32>
      %74 = tpu.matmul %59, %73, %cst_18 {dimension_numbers = #tpu.dot_dimension_numbers<[1], [0], [0], [1], [0, 0, 1, 1], [], []>} : vector<5x128xbf16>, vector<128x16xbf16>, vector<5x16xf32> -> vector<5x16xf32>
      %75 = vector.extract_strided_slice %57 {offsets = [0, 3], sizes = [128, 1], strides = [1, 1]} : vector<128x8xf32> to vector<128x1xf32>
      %76 = vector.broadcast %75 : vector<128x1xf32> to vector<128x16xf32>
      %77 = arith.mulf %46, %76 : vector<128x16xf32>
      %78 = arith.truncf %77 : vector<128x16xf32> to vector<128x16xbf16>
      %cst_19 = arith.constant dense<0.000000e+00> : vector<5x16xf32>
      %79 = tpu.matmul %59, %78, %cst_19 {dimension_numbers = #tpu.dot_dimension_numbers<[1], [0], [0], [1], [0, 0, 1, 1], [], []>} : vector<5x128xbf16>, vector<128x16xbf16>, vector<5x16xf32> -> vector<5x16xf32>
      %80 = vector.extract_strided_slice %57 {offsets = [0, 4], sizes = [128, 1], strides = [1, 1]} : vector<128x8xf32> to vector<128x1xf32>
      %81 = vector.broadcast %80 : vector<128x1xf32> to vector<128x16xf32>
      %82 = arith.mulf %46, %81 : vector<128x16xf32>
      %83 = arith.truncf %82 : vector<128x16xf32> to vector<128x16xbf16>
      %cst_20 = arith.constant dense<0.000000e+00> : vector<5x16xf32>
      %84 = tpu.matmul %59, %83, %cst_20 {dimension_numbers = #tpu.dot_dimension_numbers<[1], [0], [0], [1], [0, 0, 1, 1], [], []>} : vector<5x128xbf16>, vector<128x16xbf16>, vector<5x16xf32> -> vector<5x16xf32>
      %85 = vector.extract_strided_slice %57 {offsets = [0, 5], sizes = [128, 1], strides = [1, 1]} : vector<128x8xf32> to vector<128x1xf32>
      %86 = vector.broadcast %85 : vector<128x1xf32> to vector<128x16xf32>
      %87 = arith.mulf %46, %86 : vector<128x16xf32>
      %88 = arith.truncf %87 : vector<128x16xf32> to vector<128x16xbf16>
      %cst_21 = arith.constant dense<0.000000e+00> : vector<5x16xf32>
      %89 = tpu.matmul %59, %88, %cst_21 {dimension_numbers = #tpu.dot_dimension_numbers<[1], [0], [0], [1], [0, 0, 1, 1], [], []>} : vector<5x128xbf16>, vector<128x16xbf16>, vector<5x16xf32> -> vector<5x16xf32>
      %90 = vector.extract_strided_slice %57 {offsets = [0, 6], sizes = [128, 1], strides = [1, 1]} : vector<128x8xf32> to vector<128x1xf32>
      %91 = vector.broadcast %90 : vector<128x1xf32> to vector<128x16xf32>
      %92 = arith.mulf %46, %91 : vector<128x16xf32>
      %93 = arith.truncf %92 : vector<128x16xf32> to vector<128x16xbf16>
      %cst_22 = arith.constant dense<0.000000e+00> : vector<5x16xf32>
      %94 = tpu.matmul %59, %93, %cst_22 {dimension_numbers = #tpu.dot_dimension_numbers<[1], [0], [0], [1], [0, 0, 1, 1], [], []>} : vector<5x128xbf16>, vector<128x16xbf16>, vector<5x16xf32> -> vector<5x16xf32>
      %95 = vector.extract_strided_slice %57 {offsets = [0, 7], sizes = [128, 1], strides = [1, 1]} : vector<128x8xf32> to vector<128x1xf32>
      %96 = vector.broadcast %95 : vector<128x1xf32> to vector<128x16xf32>
      %97 = arith.mulf %46, %96 : vector<128x16xf32>
      %98 = arith.truncf %97 : vector<128x16xf32> to vector<128x16xbf16>
      %cst_23 = arith.constant dense<0.000000e+00> : vector<5x16xf32>
      %99 = tpu.matmul %59, %98, %cst_23 {dimension_numbers = #tpu.dot_dimension_numbers<[1], [0], [0], [1], [0, 0, 1, 1], [], []>} : vector<5x128xbf16>, vector<128x16xbf16>, vector<5x16xf32> -> vector<5x16xf32>
      %c0_24 = arith.constant 0 : index
      %c0_25 = arith.constant 0 : index
      %100 = vector.load %arg9[%c0_24, %c0_25] : memref<5x128xf32, #tpu.memory_space<vmem>>, vector<5x128xf32>
      %101 = tpu.concatenate %64, %69, %74, %79, %84, %89, %94, %99 in 1 : vector<5x16xf32>, vector<5x16xf32>, vector<5x16xf32>, vector<5x16xf32>, vector<5x16xf32>, vector<5x16xf32>, vector<5x16xf32>, vector<5x16xf32> -> vector<5x128xf32>
      %102 = arith.addf %100, %101 : vector<5x128xf32>
      %c0_26 = arith.constant 0 : index
      %c0_27 = arith.constant 0 : index
      %103 = vector.load %arg9[%c0_26, %c0_27] : memref<5x128xf32, #tpu.memory_space<vmem>>, vector<5x128xf32>
      tpu.vector_store %arg9[%c0_26, %c0_27], %102 {strides = array<i32>} : memref<5x128xf32, #tpu.memory_space<vmem>>, vector<5x128xf32>,
    } else {
    }
    %c1_i32 = arith.constant 1 : i32
    %16 = arith.cmpi eq, %arg2, %c1_i32 : i32
    %17 = arith.extui %16 : i1 to i32
    %c0_i32_3 = arith.constant 0 : i32
    %18 = arith.cmpi ne, %17, %c0_i32_3 : i32
    scf.if %18 {
      %c0 = arith.constant 0 : index
      %c0_4 = arith.constant 0 : index
      %19 = vector.load %arg9[%c0, %c0_4] : memref<5x128xf32, #tpu.memory_space<vmem>>, vector<5x128xf32>
      %20 = vector.extract_strided_slice %19 {offsets = [4, 0], sizes = [1, 128], strides = [1, 1]} : vector<5x128xf32> to vector<1x128xf32>
      %cst = arith.constant 9.99999993E-9 : f32
      %21 = vector.broadcast %cst : f32 to vector<1x128xf32>
      %22 = arith.addf %20, %21 : vector<1x128xf32>
      %23 = tpu.reciprocal %22 {approx = true} : vector<1x128xf32> -> vector<1x128xf32>
      %24 = vector.extract_strided_slice %19 {offsets = [0, 0], sizes = [4, 128], strides = [1, 1]} : vector<5x128xf32> to vector<4x128xf32>
      %25 = vector.broadcast %23 : vector<1x128xf32> to vector<4x128xf32>
      %26 = arith.mulf %24, %25 : vector<4x128xf32>
      %c0_5 = arith.constant 0 : index
      %c0_6 = arith.constant 0 : index
      %c0_7 = arith.constant 0 : index
      %27 = vector.load %arg7[%c0_5, %c0_6, %c0_7] : memref<1x4x128xf32, #tpu.memory_space<vmem>>, vector<1x4x128xf32>
      %28 = vector.shape_cast %27 : vector<1x4x128xf32> to vector<4x128xf32>
      %29 = vector.shape_cast %26 : vector<4x128xf32> to vector<1x4x128xf32>
      tpu.vector_store %arg7[%c0_5, %c0_6, %c0_7], %29 {strides = array<i32>} : memref<1x4x128xf32, #tpu.memory_space<vmem>>, vector<1x4x128xf32>,
      %cst_8 = arith.constant 0.000000e+00 : f32
      %30 = vector.broadcast %cst_8 : f32 to vector<1x128xf32>
      %31 = arith.cmpf ogt, %20, %30 : vector<1x128xf32>
      %32 = arith.extui %31 : vector<1x128xi1> to vector<1x128xi32>
      %33 = arith.sitofp %32 : vector<1x128xi32> to vector<1x128xf32>
      %c0_9 = arith.constant 0 : index
      %c0_10 = arith.constant 0 : index
      %c0_11 = arith.constant 0 : index
      %34 = vector.load %arg8[%c0_9, %c0_10, %c0_11] : memref<1x1x128xf32, #tpu.memory_space<vmem>>, vector<1x1x128xf32>
      %35 = vector.shape_cast %34 : vector<1x1x128xf32> to vector<1x128xf32>
      %36 = vector.shape_cast %33 : vector<1x128xf32> to vector<1x1x128xf32>
      tpu.vector_store %arg8[%c0_9, %c0_10, %c0_11], %36 {strides = array<i32>} : memref<1x1x128xf32, #tpu.memory_space<vmem>>, vector<1x1x128xf32>,
    } else {
    }
    return
  }
  func.func @transform_0(%arg0: i32, %arg1: i32, %arg2: i32, %arg3: memref<4xi32, #tpu.memory_space<smem>>, %arg4: memref<4xi32, #tpu.memory_space<smem>>) -> (i32, i32, i32) {
    %c2_i32 = arith.constant 2 : i32
    %0 = arith.muli %arg0, %c2_i32 : i32
    %1 = arith.addi %0, %arg1 : i32
    %2 = arith.index_cast %1 : i32 to index
    %3 = memref.load %arg3[%2] : memref<4xi32, #tpu.memory_space<smem>>
    %c2_i32_0 = arith.constant 2 : i32
    %4 = arith.muli %arg0, %c2_i32_0 : i32
    %5 = arith.addi %4, %arg1 : i32
    %6 = arith.index_cast %5 : i32 to index
    %7 = memref.load %arg4[%6] : memref<4xi32, #tpu.memory_space<smem>>
    %8 = arith.maxsi %arg2, %3 : i32
    %c1_i32 = arith.constant 1 : i32
    %9 = arith.subi %7, %c1_i32 : i32
    %10 = arith.maxsi %9, %3 : i32
    %11 = arith.minsi %8, %10 : i32
    %c0_i32 = arith.constant 0 : i32
    %c0_i32_1 = arith.constant 0 : i32
    return %arg0, %c0_i32, %11 : i32, i32, i32
  }
  func.func @transform_1(%arg0: i32, %arg1: i32, %arg2: i32, %arg3: memref<4xi32, #tpu.memory_space<smem>>, %arg4: memref<4xi32, #tpu.memory_space<smem>>) -> (i32, i32, i32) {
    %c2_i32 = arith.constant 2 : i32
    %0 = arith.muli %arg0, %c2_i32 : i32
    %1 = arith.addi %0, %arg1 : i32
    %2 = arith.index_cast %1 : i32 to index
    %3 = memref.load %arg3[%2] : memref<4xi32, #tpu.memory_space<smem>>
    %c2_i32_0 = arith.constant 2 : i32
    %4 = arith.muli %arg0, %c2_i32_0 : i32
    %5 = arith.addi %4, %arg1 : i32
    %6 = arith.index_cast %5 : i32 to index
    %7 = memref.load %arg4[%6] : memref<4xi32, #tpu.memory_space<smem>>
    %8 = arith.maxsi %arg2, %3 : i32
    %c1_i32 = arith.constant 1 : i32
    %9 = arith.subi %7, %c1_i32 : i32
    %10 = arith.maxsi %9, %3 : i32
    %11 = arith.minsi %8, %10 : i32
    %c0_i32 = arith.constant 0 : i32
    %c0_i32_1 = arith.constant 0 : i32
    return %arg0, %11, %c0_i32 : i32, i32, i32
  }
  func.func @transform_2(%arg0: i32, %arg1: i32, %arg2: i32, %arg3: memref<4xi32, #tpu.memory_space<smem>>, %arg4: memref<4xi32, #tpu.memory_space<smem>>) -> (i32, i32, i32) {
    %c0_i32 = arith.constant 0 : i32
    %c0_i32_0 = arith.constant 0 : i32
    return %arg0, %c0_i32, %arg1 : i32, i32, i32
  }
  func.func @transform_3(%arg0: i32, %arg1: i32, %arg2: i32, %arg3: memref<4xi32, #tpu.memory_space<smem>>, %arg4: memref<4xi32, #tpu.memory_space<smem>>) -> (i32, i32, i32) {
    %c0_i32 = arith.constant 0 : i32
    %c0_i32_0 = arith.constant 0 : i32
    return %arg0, %c0_i32, %arg1 : i32, i32, i32
  }
}

</mosaic_0001>

<bundles_post_ra>
// kernel: tpu_custom_call.1
= control target key start
LH: loop header
LB: loop body
LE: loop exit
PB: predicated region body
PF: predicated region fallthrough
CT: control target
= control target key end

     0   :  { %s3804_s0 = inlined_call_operand.vmem [shape: s32[4], index: 0, kind: input, shape index: {}]   ;;  %s3805_s2 = inlined_call_operand.vmem [shape: bf16[2,5,256], index: 2, kind: input, shape index: {}]   ;;  %s3806_s3 = inlined_call_operand.vmem [shape: f32[2,256,2], index: 3, kind: input, shape index: {}]   ;;  %s3807_s4 = inlined_call_operand.hbm [shape: f32[2,4,256], index: 4, kind: output, shape index: {0}]   ;;  %s3808_s5 = inlined_call_operand.hbm [shape: f32[2,1,256], index: 5, kind: output, shape index: {1}]   ;;  %s3809_s1 = inlined_call_operand.vmem [shape: s32[4], index: 1, kind: input, shape index: {}]  }
   0x1   :  { %s11_s20 = sshll.u32 %s3804_s0, 4  ;;  %s15_s23 = sshll.u32 %s3809_s1, 4  ;;  %s12_s20 = int_to_ptr.vmem [resolvable:$true] %s11_s20  ;;  %s16_s23 = int_to_ptr.vmem [resolvable:$true] %s15_s23 }
   0x2   :  { %s2632_s24 = scalar_lea.vmem %s12_s20, 16  ;;  %p2637_p1 = scmp.lt.s32.totalorder %s12_s20, %s12_s20 }
   0x3   :  { %p2633_p0 = scmp.ne.s32.totalorder %s12_s20, %s2632_s24  ;;  %p2638_p2 = scmp.lt.s32.totalorder %s2632_s24, %s2632_s24 }
   0x5   :  { %p2639_p3 = por %p2638_p2, %p2637_p1 }
   0x7   :  { %p2640_p4 = pnand %p2639_p3, %p2633_p0 }
   0x9   :  { %2643 = shalt.err (!%p2640_p4)  }
   0xa   :  { %s2802_s25 = smov [#allocation4]   ;;  %s2644_s26 = scalar_lea.vmem %s16_s23, 16 }
   0xb   :  { %14 = dma.vmem_to_smem %s12_s20, 16, %s2802_s25, [#allocation3] }
   0xc   :  { %p2645_p5 = scmp.ne.s32.totalorder %s16_s23, %s2644_s26  ;;  %p2649_p6 = scmp.lt.s32.totalorder %s16_s23, %s16_s23 }
   0xd   :  { %p2650_p7 = scmp.lt.s32.totalorder %s2644_s26, %s2644_s26 }
   0xf   :  { %p2651_p8 = por %p2650_p7, %p2649_p6 }
  0x11   :  { %p2652_p9 = pnand %p2651_p8, %p2645_p5 }
  0x13   :  { %2655 = shalt.err (!%p2652_p9)  }
  0x14   :  { %s2803_s0 = smov [#allocation5]  }
  0x15   :  { %18 = dma.vmem_to_smem %s16_s23, 16, %s2803_s0, [#allocation3] }
  0x16   :  { %2752 = dma.done.wait [#allocation3], 32 }
  0x17   :  { %2753 = vsyncadd [#allocation3], 4294967264 }
  0x18   :  { %20 = sfence }
  0x19   :  { %21 = vsyncpa [#allocation7], 0 }
  0x1a   :  { %23 = vsyncpa [#allocation7 + $0x1], 0 }
  0x1b   :  { %24 = vsyncpa [#allocation9], 0 }
  0x1c   :  { %26 = vsyncpa [#allocation9 + $0x1], 0  ;;  %s2861_s1 = smov 0   ;;  %s2863_s27 = smov 0  }
  0x1d   :  { %s2865_s28 = smov 0   ;;  %s2867_s29 = smov 0  }
  0x1e   :  { %s2869_s30 = smov 0   ;;  %s2871_s6 = smov 0  }
  0x1f   :  { %s2873_s7 = smov 0   ;;  %s2875_s8 = smov 0  }
  0x20   :  { %s2877_s9 = smov 0   ;;  %s2879_s10 = smov 0  }
  0x21 LB: > { %3816 = sst [smem:[#allocation13_spill]] %s2772_s28  ;;  %s2124_s11 = sadd.s32 4294967295, %s2800_s10   ;;  %s2800_s10 = sphi %s2879_s10, %s32_s10   ;;  %s2796_s9 = sphi %s2877_s9, %s3838_s9   ;;  %s2792_s8 = sphi %s2875_s8, %s3837_s8   ;;  %s2788_s7 = sphi %s2873_s7, %s3836_s7   ;;  %s2784_s6 = sphi %s2871_s6, %s3835_s6   ;;  %s2780_s30 = sphi %s2869_s30, %s3834_s30   ;;  %s2776_s29 = sphi %s2867_s29, %s3833_s29   ;;  %s2772_s28 = sphi %s2865_s28, %s3832_s28   ;;  %s2768_s27 = sphi %s2863_s27, %s3840_s27   ;;  %s2764_s1 = sphi %s2861_s1, %s3839_s1  }
  0x22   : > { %3817 = sst [smem:[#allocation14_spill]] %s2788_s7  ;;  %s2125_s12 = sadd.s32 4294967294, %s2800_s10  }
  0x23   : > { %3818 = sst [smem:[#allocation15_spill]] %s2792_s8  ;;  %s44_s13 = sadd.s32 1, %s2788_s7 }
  0x24   : > { %3819 = sst [smem:[#allocation16_spill]] %s2796_s9  ;;  %p45_p10 = scmp.ge.s32.totalorder %s44_s13, 2 }
  0x25   : > { %s47_s14 = sadd.s32 1, %s2792_s8  ;;  %s51_s15 = sadd.s32 1, %s2796_s9 }
  0x26   : > { %p170_p11 = scmp.ne.s32.totalorder %s2772_s28, %s2768_s27  ;;  %s3842_s13 = smov (%p45_p10, %s44_s13), 0 }
  0x27   : > { %3820 = sst [smem:[#allocation17_spill]] %s3842_s13  ;;  %s3844_s14 = smov (!%p45_p10, %s47_s14), %s2792_s8 }
  0x28   : > { %p171_p12 = scmp.eq.s32.totalorder %s2124_s11, 7  ;;  %p176_p13 = scmp.ne.s32.totalorder %s2768_s27, %s2764_s1 }
  0x29   : > { %p49_p0 = scmp.ge.s32.totalorder %s3844_s14, 2  ;;  %p177_p1 = scmp.eq.s32.totalorder %s2125_s12, 7 }
  0x2a   : > { %p2923_p2 = por %p171_p12, %p170_p11  ;;  %p2136_p4 = scmp.ge.s32.totalorder %s2800_s10, 1 }
  0x2b   : > { %s3846_s14 = smov (%p49_p0, %s3844_s14), 0  ;;  %s3848_s15 = smov (!%p49_p0, %s51_s15), %s2796_s9 }
  0x2c   : > { %3822 = sst [smem:[#allocation18_spill]] %s3846_s14  ;;  %p2930_p3 = por %p177_p1, %p176_p13 }
  0x2d   : > { %p53_p5 = scmp.ge.s32.totalorder %s3848_s15, 2  ;;  %p291_p6 = scmp.lt.s32.totalorder %s2800_s10, 9 }
  0x2e   : > { %s156_s18 = ssub.s32 %s2792_s8, %s3846_s14  ;;  %s160_s21 = sadd.s32 1, %s2772_s28 }
  0x2f   : > { %s3850_s15 = smov (%p53_p5, %s3848_s15), 0  ;;  %p292_p7 = pnand %p2136_p4, %p291_p6 }
  0x30   : > { %3824 = sst [smem:[#allocation19_spill]] %s3850_s15  ;;  %s155_s19 = ssub.s32 %s2796_s9, %s3850_s15 }
  0x31   : > { %s157_s20 = sor.u32 %s156_s18, %s155_s19  ;;  %295 = sbr.rel (%p292_p7) target bundleno = 1173 (0x495), region = 28 }
  0x32   : > { %p158_p8 = scmp.eq.s32.totalorder %s157_s20, 0  ;;  %s2947_s23 = sand.u32 (!%p292_p7), 1, %s2768_s27  }
  0x33   : > { %s2138_s24 = sshll.u32 (!%p292_p7), %s2784_s6, 1  ;;  %p364_p9 = scmp.lt.s32.totalorder (!%p292_p7), %s2784_s6, 1 }
  0x34   : > { %s2944_s22 = scalar_select %p158_p8, %s2772_s28, %s160_s21  }
  0x35   : > { %s2952_s26 = sadd.s32 (!%p292_p7), %s2780_s30, %s2138_s24  ;;  %s3826_s28 = sshll.u32 (!%p292_p7), %s2947_s23, 2 }
  0x36   : > { %3825 = sst [smem:[#allocation20_spill]] %s2944_s22  ;;  %p2147_p6 = scmp.ne.s32.totalorder (!%p292_p7), %s2776_s29, 0 }
  0x37   : > { %s355_s0 = sld [smem:[#allocation4 + %s2952_s26]] (!%p292_p7) }
  0x38   : > { %s356_s11 = sld [smem:[#allocation5 + %s2952_s26]]  ;;  %s3852_s6 = smov (!%p364_p9, %s2784_s6), 1  ;;  %v2804_v0 = vmov (!%p2147_p6), 0.0  }
  0x39   : > { %s385_s12 = sld [smem:[#allocation4 + %s2952_s26]]  ;;  %s2140_s25 = sshll.u32 %s3852_s6, 1  ;;  %420 = vst [vmem:[#allocation2] sm:$0x1f] (!%p2147_p6), %v2804_v0 }
  0x3a   : > { %s386_s18 = sld [smem:[#allocation5 + %s2952_s26]] }
  0x3d   : > { %p357_p10 = scmp.gt.s32.totalorder %s2776_s29, %s355_s0 }
  0x3e   : > { %s2139_s19 = sadd.s32 4294967295, %s356_s11 }
  0x3f   : > { %p360_p11 = scmp.gt.s32.totalorder %s2139_s19, %s355_s0  ;;  %p387_p12 = scmp.gt.s32.totalorder %s2776_s29, %s385_s12 }
  0x40   : > { %s358_s20 = scalar_select %p357_p10, %s2776_s29, %s355_s0 }
  0x41   : > { %s3854_s19 = smov (!%p360_p11, %s2139_s19), %s355_s0  ;;  %s2143_s24 = sadd.s32 4294967295, %s386_s18 }
  0x42   : > { %s388_s21 = scalar_select %p387_p12, %s2776_s29, %s385_s12 }
  0x43   : > { %p362_p13 = scmp.lt.s32.totalorder %s358_s20, %s3854_s19  ;;  %p390_p0 = scmp.gt.s32.totalorder %s2143_s24, %s385_s12 }
  0x44   : > { %s2145_s18 = sshll.u32 %s3852_s6, 5 }
  0x45   : > { %s3856_s20 = smov (!%p362_p13, %s358_s20), %s3854_s19  ;;  %s3858_s24 = smov (!%p390_p0, %s2143_s24), %s385_s12 }
  0x46   : > { %p366_p1 = scmp.lt.s32.totalorder %s3856_s20, 1  ;;  %p392_p4 = scmp.lt.s32.totalorder %s388_s21, %s3858_s24 }
  0x48   : > { %s3860_s20 = smov (!%p366_p1, %s3856_s20), 1  ;;  %s3862_s21 = smov (!%p392_p4, %s388_s21), %s3858_s24 }
  0x49   : > { %s369_s15 = sadd.s32 %s2140_s25, %s3860_s20  ;;  %s2144_s11 = sshll.u32 %s3862_s21, 4 }
  0x4a   : > { %s2141_s14 = sshll.u32 %s369_s15, 2  ;;  %p397_p5 = scmp.lt.s32.totalorder %s2144_s11, 31 }
  0x4b   : > { %s2967_s0 = scalar_lea.vmem %s3805_s2, %s2141_s14  ;;  %s2976_s24 = scalar_lea.vmem [#allocation6], %s3826_s28 }
  0x4c   : > { %s3864_s11 = smov (!%p397_p5, %s2144_s11), 31  ;;  %s352_s15 = scalar_lea.vmem [#allocation8], %s2947_s23 }
  0x4d   : > { %s400_s19 = sadd.s32 %s2145_s18, %s3864_s11  ;;  %419 = sbr.rel (%p2147_p6) target bundleno = 84 (0x54), region = 32 }
  0x4e   : > { %s2146_s12 = sshll.u32 %s400_s19, 3 }
  0x4f   : > { %s2972_s22 = scalar_lea.vmem %s3806_s3, %s2146_s12 }
  0x54 PF: > { %s423_s6 = sld [smem:[#allocation4 + %s2952_s26]] }
  0x55   : > { %s424_s9 = sld [smem:[#allocation5 + %s2952_s26]] }
  0x5a   : > { %p425_p7 = scmp.ge.s32.totalorder %s2776_s29, %s423_s6 }
  0x5b   : > { %p426_p8 = scmp.lt.s32.totalorder %s2776_s29, %s424_s9 }
  0x5d   : > { %p427_p9 = pnand %p426_p8, %p425_p7 }
  0x5e   : > { %v433_v1 = vld [vmem:[%s2972_s22 + $0x10] sm:$0xff] (!%p427_p9)  ;;  %v431_v2 = vld [vmem:[%s2972_s22] sm:$0xff] (!%p427_p9)  ;;  %v2805_v3 = vmov (!%p427_p9), 1   ;;  %v2806_v4 = vmov (!%p427_p9), 0   ;;  %v434_v5 = vld [vmem:[%s2972_s22 + $0x18] sm:$0xff] (!%p427_p9)  ;;  %v447_v19 = vlaneseq (!%p427_p9)  ;;  %s2149_s28 = sshll.u32 (!%p427_p9), %s2780_s30, 3 }
  0x5f   : > { %430 = sbr.rel (%p427_p9) target bundleno = 1100 (0x44c), region = 36  ;;  %2505 = vset.pattern.permute.xlu0 (!%p427_p9), %v2805_v3  ;;  %2504 = vset.pattern.permute.xlu1 (!%p427_p9), %v2806_v4  ;;  %v436_v6 = vld [vmem:[%s2972_s22 + $0x28] sm:$0xff] (!%p427_p9)  ;;  %v438_v7 = vld [vmem:[%s2972_s22 + $0x38] sm:$0xff] (!%p427_p9)  ;;  %v435_v13 = vld [vmem:[%s2972_s22 + $0x20] sm:$0xff] (!%p427_p9)  ;;  %v451_v20 = vstv (!%p427_p9), %s2149_s28  ;;  %s2815_s30 = smov (!%p427_p9), 16  }
  0x60   : > { %466 = vperm.xlu1 (!%p427_p9), %2504, %v433_v1   ;;  %551 = vperm.xlu0 (!%p427_p9), %2505, %v431_v2   ;;  %v440_v8 = vld [vmem:[%s2972_s22 + $0x48] sm:$0xff] (!%p427_p9)  ;;  %v442_v9 = vld [vmem:[%s2972_s22 + $0x58] sm:$0xff] (!%p427_p9)  ;;  %v437_v14 = vld [vmem:[%s2972_s22 + $0x30] sm:$0xff] (!%p427_p9)  ;;  %v3006_v21 = vand.u32 (!%p427_p9), 127, %v447_v19  ;;  %s2816_s7 = smov (!%p427_p9), 32   ;;  %s2817_s8 = smov (!%p427_p9), 48  }
  0x61   : > { %v444_v10 = vld [vmem:[%s2972_s22 + $0x68] sm:$0xff] (!%p427_p9)  ;;  %v446_v11 = vld [vmem:[%s2972_s22 + $0x78] sm:$0xff] (!%p427_p9)  ;;  %v439_v15 = vld [vmem:[%s2972_s22 + $0x40] sm:$0xff] (!%p427_p9)  ;;  %s2818_s13 = smov (!%p427_p9), 64   ;;  %s2819_s14 = smov (!%p427_p9), 80  }
  0x62   : > { %v432_v12 = vld [vmem:[%s2972_s22 + $0x8] sm:$0xff] (!%p427_p9)  ;;  %v441_v16 = vld [vmem:[%s2972_s22 + $0x50] sm:$0xff] (!%p427_p9)  ;;  %v443_v17 = vld [vmem:[%s2972_s22 + $0x60] sm:$0xff] (!%p427_p9)  ;;  %v452_v22 = vadd.s32 (!%p427_p9), %v451_v20, %v3006_v21  ;;  %s2821_s25 = smov (!%p427_p9), 112  }
  0x63   : > { %v445_v18 = vld [vmem:[%s2972_s22 + $0x70] sm:$0xff] (!%p427_p9)  ;;  %s2820_s22 = smov (!%p427_p9), 96  }
  0x64   : > { %471 = vperm.xlu1 (!%p427_p9), %2504, %v434_v5   ;;  %563 = vperm.xlu0 (!%p427_p9), %2505, %v434_v5   ;;  %v3009_v23 = vcvt.s32.f32 (!%p427_p9), %v452_v22 }
  0x68   : > { %481 = vperm.xlu1 %2504, %v436_v6   ;;  %571 = vperm.xlu0 %2505, %v436_v6  }
  0x6c   : > { %491 = vperm.xlu1 %2504, %v438_v7   ;;  %579 = vperm.xlu0 %2505, %v438_v7  }
  0x70   : > { %501 = vperm.xlu1 %2504, %v440_v8   ;;  %587 = vperm.xlu0 %2505, %v440_v8  }
  0x74   : > { %511 = vperm.xlu1 %2504, %v442_v9   ;;  %595 = vperm.xlu0 %2505, %v442_v9  }
  0x78   : > { %521 = vperm.xlu1 %2504, %v444_v10   ;;  %603 = vperm.xlu0 %2505, %v444_v10  }
  0x7c   : > { %531 = vperm.xlu1 %2504, %v446_v11   ;;  %611 = vperm.xlu0 %2505, %v446_v11  }
  0x80   : > { %2506 = vset.pattern.permute.xlu1 %v2805_v3  ;;  %2507 = vset.pattern.permute.xlu0 %v2806_v4 }
  0x81   : > { %555 = vperm.xlu1 %2506, %v432_v12   ;;  %456 = vperm.xlu0 %2507, %v431_v2  }
  0x85   : > { %559 = vperm.xlu1 %2506, %v433_v1   ;;  %461 = vperm.xlu0 %2507, %v432_v12  }
  0x89   : > { %567 = vperm.xlu1 %2506, %v435_v13   ;;  %476 = vperm.xlu0 %2507, %v435_v13  }
  0x8d   : > { %575 = vperm.xlu1 %2506, %v437_v14   ;;  %486 = vperm.xlu0 %2507, %v437_v14  }
  0x91   : > { %583 = vperm.xlu1 %2506, %v439_v15   ;;  %496 = vperm.xlu0 %2507, %v439_v15  }
  0x95   : > { %591 = vperm.xlu1 %2506, %v441_v16   ;;  %506 = vperm.xlu0 %2507, %v441_v16  }
  0x99   : > { %599 = vperm.xlu1 %2506, %v443_v17   ;;  %516 = vperm.xlu0 %2507, %v443_v17  }
  0x9d   : > { %607 = vperm.xlu1 %2506, %v445_v18   ;;  %526 = vperm.xlu0 %2507, %v445_v18  }
  0xa1   : > { %2508 = vset.pattern.permute.xlu1 %v2806_v4 }
  0xdf   : > { %v3011_v24 = vpop.permute.xlu1 %466  ;;  %v552_v25 = vpop.permute.xlu0 %551 }
  0xe0   : > { %v614_v26 = vsub.f32 %v3009_v23, %v552_v25 }
  0xe2   : > { %v774_v27 = vmul.f32 %v614_v26, %v614_v26  ;;  %v742_v33 = vand.u32 2147483647, %v614_v26 }
  0xe3   : > { %v3014_v28 = vpop.permute.xlu1 %471  ;;  %v564_v35 = vpop.permute.xlu0 %563 }
  0xe4   : > { %v790_v29 = vsub.f32 0.0, %v774_v27  ;;  %vm758_vm0 = vcmp.le.f32.partialorder %v742_v33, 4.0  ;;  %v3032_v43 = vsub.f32 %v3009_v23, %v564_v35 }
  0xe6   : > { %v806_v30 = vmul.f32 1.442695, %v790_v29  ;;  %v777_v46 = vmul.f32 %v3032_v43, %v3032_v43  ;;  %v745_v33 = vand.u32 2147483647, %v3032_v43 }
  0xe7   : > { %v3016_v31 = vpop.permute.xlu1 %481  ;;  %v572_v39 = vpop.permute.xlu0 %571 }
  0xe8   : > { %2566 = vpow2.f32 %v806_v30  ;;  %v3038_v47 = vsub.f32 %v3009_v23, %v572_v39  ;;  %v793_v54 = vsub.f32 0.0, %v777_v46  ;;  %vm3088_vm3 = vcmp.le.f32.partialorder %v745_v33, 4.0 }
  0xea   : > { %v779_v55 = vmul.f32 %v3038_v47, %v3038_v47  ;;  %v812_v0 = vmul.f32 1.442695, %v793_v54 }
  0xeb   : > { %v3018_v32 = vpop.permute.xlu1 %491  ;;  %v580_v42 = vpop.permute.xlu0 %579 }
  0xec   : > { %v3041_v51 = vsub.f32 %v3009_v23, %v580_v42  ;;  %v795_v1 = vsub.f32 0.0, %v779_v55 }
  0xee   : > { %v781_v59 = vmul.f32 %v3041_v51, %v3041_v51  ;;  %v816_v12 = vmul.f32 1.442695, %v795_v1 }
  0xef   : > { %v3020_v34 = vpop.permute.xlu1 %501  ;;  %v588_v48 = vpop.permute.xlu0 %587 }
  0xf0   : > { %v3052_v63 = vsub.f32 %v3009_v23, %v588_v48  ;;  %v797_v7 = vsub.f32 0.0, %v781_v59 }
  0xf2   : > { %v2567_v36 = vpop.eup %2566  ;;  %v783_v9 = vmul.f32 %v3052_v63, %v3052_v63  ;;  %v820_v18 = vmul.f32 1.442695, %v797_v7 }
  0xf3   : > { %v3022_v37 = vpop.permute.xlu1 %511  ;;  %v3024_v38 = vsel %vm758_vm0, %v2567_v36, 0.0  ;;  %v596_v60 = vpop.permute.xlu0 %595  ;;  %vm2810_vm0 = vmmov 0  }
  0xf4   : > { %857 = vperm.xlu1 %2508, %v3024_v38   ;;  %v3059_v10 = vsub.f32 %v3009_v23, %v596_v60  ;;  %v799_v20 = vsub.f32 0.0, %v783_v9 }
  0xf6   : > { %v785_v22 = vmul.f32 %v3059_v10, %v3059_v10 }
  0xf7   : > { %v3027_v40 = vpop.permute.xlu1 %521  ;;  %v604_v13 = vpop.permute.xlu0 %603 }
  0xf8   : > { %v3072_v25 = vsub.f32 %v3009_v23, %v604_v13  ;;  %v801_v46 = vsub.f32 0.0, %v785_v22 }
  0xfa   : > { %v787_v48 = vmul.f32 %v3072_v25, %v3072_v25 }
  0xfb   : > { %v3029_v41 = vpop.permute.xlu1 %531 }
  0xfc   : > { %v803_v60 = vsub.f32 0.0, %v787_v48  ;;  %v755_v48 = vand.u32 2147483647, %v3072_v25 }
  0xfe   : > { %v832_v13 = vmul.f32 1.442695, %v803_v60  ;;  %vm771_vm13 = vcmp.le.f32.partialorder %v755_v48, 4.0 }
 0x100   : > { %v556_v44 = vpop.permute.xlu1 %555 }
 0x101   : > { %v615_v45 = vsub.f32 %v3009_v23, %v556_v44 }
 0x103   : > { %v775_v49 = vmul.f32 %v615_v45, %v615_v45  ;;  %v743_v15 = vand.u32 2147483647, %v615_v45  ;;  %v824_v45 = vmul.f32 1.442695, %v799_v20 }
 0x104   : > { %v560_v50 = vpop.permute.xlu1 %559 }
 0x105   : > { %v616_v52 = vsub.f32 %v3009_v23, %v560_v50  ;;  %v791_v53 = vsub.f32 0.0, %v775_v49  ;;  %vm759_vm1 = vcmp.le.f32.partialorder %v743_v15, 4.0 }
 0x107   : > { %v776_v56 = vmul.f32 %v616_v52, %v616_v52  ;;  %v808_v57 = vmul.f32 1.442695, %v791_v53  ;;  %v744_v27 = vand.u32 2147483647, %v616_v52 }
 0x108   : > { %v568_v58 = vpop.permute.xlu1 %567 }
 0x109   : > { %v792_v61 = vsub.f32 0.0, %v776_v56  ;;  %v3049_v62 = vsub.f32 %v3009_v23, %v568_v58  ;;  %2568 = vpow2.f32 %v808_v57  ;;  %vm760_vm2 = vcmp.le.f32.partialorder %v744_v27, 4.0 }
 0x10a   : > { %v747_v57 = vand.u32 2147483647, %v3038_v47  ;;  %v749_v47 = vand.u32 2147483647, %v3041_v51 }
 0x10b   : > { %v810_v2 = vmul.f32 1.442695, %v792_v61  ;;  %v778_v5 = vmul.f32 %v3049_v62, %v3049_v62  ;;  %v746_v43 = vand.u32 2147483647, %v3049_v62  ;;  %v828_v62 = vmul.f32 1.442695, %v801_v46 }
 0x10c   : > { %v576_v6 = vpop.permute.xlu1 %575  ;;  %vm763_vm5 = vcmp.le.f32.partialorder %v747_v57, 4.0  ;;  %vm765_vm6 = vcmp.le.f32.partialorder %v749_v47, 4.0 }
 0x10d   : > { %2570 = vpow2.f32 %v810_v2  ;;  %v794_v8 = vsub.f32 0.0, %v778_v5  ;;  %v3062_v11 = vsub.f32 %v3009_v23, %v576_v6  ;;  %vm762_vm4 = vcmp.le.f32.partialorder %v746_v43, 4.0 }
 0x10e   : > { %2572 = vpow2.f32 %v812_v0 }
 0x10f   : > { %v814_v14 = vmul.f32 1.442695, %v794_v8  ;;  %v780_v16 = vmul.f32 %v3062_v11, %v3062_v11  ;;  %v748_v6 = vand.u32 2147483647, %v3062_v11 }
 0x110   : > { %v584_v17 = vpop.permute.xlu1 %583 }
 0x111   : > { %2574 = vpow2.f32 %v814_v14  ;;  %v3067_v19 = vsub.f32 %v3009_v23, %v584_v17  ;;  %v796_v26 = vsub.f32 0.0, %v780_v16  ;;  %vm764_vm7 = vcmp.le.f32.partialorder %v748_v6, 4.0 }
 0x112   : > { %2576 = vpow2.f32 %v816_v12  ;;  %v3197_v6 = vcvt.s32.f32 %v3006_v21 }
 0x113   : > { %v782_v29 = vmul.f32 %v3067_v19, %v3067_v19  ;;  %v2569_v30 = vpop.eup %2568  ;;  %v818_v35 = vmul.f32 1.442695, %v796_v26  ;;  %2578 = vpow2.f32 %v820_v18  ;;  %v750_v51 = vand.u32 2147483647, %v3067_v19 }
 0x114   : > { %v592_v36 = vpop.permute.xlu1 %591  ;;  %v3077_v39 = vsel %vm759_vm1, %v2569_v30, 0.0  ;;  %v751_v18 = vand.u32 2147483647, %v3052_v63  ;;  %v2807_v63 = vmov 0.0  }
 0x115   : > { %v798_v42 = vsub.f32 0.0, %v782_v29  ;;  %v3080_v44 = vsub.f32 %v3009_v23, %v592_v36  ;;  %2580 = vpow2.f32 %v818_v35  ;;  %862 = vperm.xlu0 %2507, %v3077_v39   ;;  %vm766_vm8 = vcmp.le.f32.partialorder %v750_v51, 4.0  ;;  %2231 = vmatprep.subr.bf16.mxu0 %v2807_v63 }
 0x116   : > { %2251 = vmatprep.subr.bf16.mxu1 %v2807_v63  ;;  %vm767_vm9 = vcmp.le.f32.partialorder %v751_v18, 4.0  ;;  %v753_v35 = vand.u32 2147483647, %v3059_v10  ;;  %2247 = vmatprep.mubr.msk.bf16.mxu0 %vm2810_vm0, %v2807_v63  ;;  %v3217_v51 = vsub.f32 %v3197_v6, %v3011_v24  ;;  %v3233_v24 = vsub.f32 %v3197_v6, %v3016_v31 }
 0x117   : > { %v2571_v49 = vpop.eup %2570  ;;  %v822_v50 = vmul.f32 1.442695, %v798_v42  ;;  %v784_v52 = vmul.f32 %v3080_v44, %v3080_v44  ;;  %v752_v19 = vand.u32 2147483647, %v3080_v44  ;;  %2267 = vmatprep.mubr.msk.bf16.mxu1 %vm2810_vm0, %v2807_v63 }
 0x118   : > { %v3092_v54 = vsel %vm760_vm2, %v2571_v49, 0.0  ;;  %v600_v55 = vpop.permute.xlu1 %599  ;;  %v2573_v56 = vpop.eup %2572  ;;  %vm769_vm11 = vcmp.le.f32.partialorder %v753_v35, 4.0  ;;  %v667_v31 = vmul.f32 %v3233_v24, %v3233_v24 }
 0x119   : > { %2582 = vpow2.f32 %v822_v50  ;;  %v800_v58 = vsub.f32 0.0, %v784_v52  ;;  %v3096_v59 = vsub.f32 %v3009_v23, %v600_v55  ;;  %867 = vperm.xlu1 %2508, %v3092_v54   ;;  %v3103_v2 = vsel %vm3088_vm3, %v2573_v56, 0.0  ;;  %v612_v55 = vpop.permute.xlu0 %611 }
 0x11a   : > { %2584 = vpow2.f32 %v824_v45  ;;  %vm768_vm10 = vcmp.le.f32.partialorder %v752_v19, 4.0  ;;  %v629_v25 = vsub.f32 %v3009_v23, %v612_v55 }
 0x11b   : > { %v2575_v61 = vpop.eup %2574  ;;  %v826_v0 = vmul.f32 1.442695, %v800_v58  ;;  %v786_v1 = vmul.f32 %v3096_v59, %v3096_v59  ;;  %v754_v42 = vand.u32 2147483647, %v3096_v59 }
 0x11c   : > { %v3106_v5 = vsel %vm762_vm4, %v2575_v61, 0.0  ;;  %v608_v7 = vpop.permute.xlu1 %607  ;;  %v2577_v8 = vpop.eup %2576  ;;  %v789_v58 = vmul.f32 %v629_v25, %v629_v25 }
 0x11d   : > { %2586 = vpow2.f32 %v826_v0  ;;  %v802_v9 = vsub.f32 0.0, %v786_v1  ;;  %v628_v12 = vsub.f32 %v3009_v23, %v608_v7  ;;  %877 = vperm.xlu0 %2507, %v3106_v5   ;;  %872 = vperm.xlu1 %2508, %v3103_v2   ;;  %v2579_v14 = vpop.eup %2578  ;;  %v3113_v11 = vsel %vm763_vm5, %v2577_v8, 0.0  ;;  %v457_v0 = vpop.permute.xlu0 %456 }
 0x11e   : > { %2588 = vpow2.f32 %v828_v62  ;;  %v3121_v30 = vsel %vm765_vm6, %v2579_v14, 0.0  ;;  %vm770_vm12 = vcmp.le.f32.partialorder %v754_v42, 4.0  ;;  %v805_v59 = vsub.f32 0.0, %v789_v58 }
 0x11f   : > { %v830_v15 = vmul.f32 1.442695, %v802_v9  ;;  %v788_v16 = vmul.f32 %v628_v12, %v628_v12  ;;  %v2581_v17 = vpop.eup %2580  ;;  %v756_v49 = vand.u32 2147483647, %v628_v12  ;;  %v2808_v62 = vmov 2  }
 0x120   : > { %v3116_v20 = vsel %vm764_vm7, %v2581_v17, 0.0  ;;  %v836_v60 = vmul.f32 1.442695, %v805_v59  ;;  %v3200_v7 = vsub.f32 %v3197_v6, %v457_v0  ;;  %v2811_v42 = vmov 4  }
 0x121   : > { %2590 = vpow2.f32 %v830_v15  ;;  %v804_v22 = vsub.f32 0.0, %v788_v16  ;;  %882 = vperm.xlu1 %2508, %v3113_v11   ;;  %887 = vperm.xlu0 %2507, %v3116_v20   ;;  %vm772_vm14 = vcmp.le.f32.partialorder %v756_v49, 4.0  ;;  %v462_v1 = vpop.permute.xlu0 %461  ;;  %v3222_v16 = vsub.f32 %v3197_v6, %v3014_v28 }
 0x122   : > { %2592 = vpow2.f32 %v832_v13  ;;  %v3205_v8 = vsub.f32 %v3197_v6, %v462_v1  ;;  %v662_v12 = vmul.f32 %v3200_v7, %v3200_v7  ;;  %v3263_v58 = vsub.f32 %v3197_v6, %v3020_v34 }
 0x123   : > { %v2583_v26 = vpop.eup %2582  ;;  %v834_v27 = vmul.f32 1.442695, %v804_v22  ;;  %v664_v22 = vmul.f32 %v3217_v51, %v3217_v51  ;;  %v665_v28 = vmul.f32 %v3222_v16, %v3222_v16  ;;  %v630_v59 = vand.u32 2147483647, %v3200_v7 }
 0x124   : > { %v2585_v29 = vpop.eup %2584  ;;  %v3123_v33 = vsel %vm766_vm8, %v2583_v26, 0.0  ;;  %v663_v21 = vmul.f32 %v3205_v8, %v3205_v8  ;;  %v678_v13 = vsub.f32 0.0, %v662_v12  ;;  %v3275_v34 = vsub.f32 %v3197_v6, %v3022_v37 }
 0x125   : > { %2594 = vpow2.f32 %v834_v27  ;;  %892 = vperm.xlu1 %2508, %v3121_v30   ;;  %897 = vperm.xlu0 %2507, %v3123_v33   ;;  %v3131_v44 = vsel %vm767_vm9, %v2585_v29, 0.0  ;;  %v477_v47 = vpop.permute.xlu0 %476  ;;  %v680_v35 = vsub.f32 0.0, %v664_v22  ;;  %vm646_vm1 = vcmp.le.f32.partialorder %v630_v59, 4.0 }
 0x126   : > { %2596 = vpow2.f32 %v836_v60  ;;  %v679_v15 = vsub.f32 0.0, %v663_v21  ;;  %v694_v17 = vmul.f32 1.442695, %v678_v13  ;;  %v3226_v18 = vsub.f32 %v3197_v6, %v477_v47 }
 0x127   : > { %v2587_v36 = vpop.eup %2586  ;;  %v631_v60 = vand.u32 2147483647, %v3205_v8  ;;  %v671_v8 = vmul.f32 %v3263_v58, %v3263_v58  ;;  %v673_v22 = vmul.f32 %v3275_v34, %v3275_v34 }
 0x128   : > { %v3133_v45 = vsel %vm768_vm10, %v2587_v36, 0.0  ;;  %v2589_v46 = vpop.eup %2588  ;;  %v696_v26 = vmul.f32 1.442695, %v679_v15  ;;  %2598 = vpow2.f32 %v694_v17  ;;  %v666_v29 = vmul.f32 %v3226_v18, %v3226_v18 }
 0x129   : > { %902 = vperm.xlu1 %2508, %v3131_v44   ;;  %907 = vperm.xlu0 %2507, %v3133_v45   ;;  %v3138_v50 = vsel %vm769_vm11, %v2589_v46, 0.0  ;;  %v487_v9 = vpop.permute.xlu0 %486  ;;  %v3248_v36 = vsub.f32 %v3197_v6, %v3018_v32  ;;  %v681_v46 = vsub.f32 0.0, %v665_v28  ;;  %v683_v32 = vsub.f32 0.0, %v667_v31 }
 0x12a   : > { %v3239_v27 = vsub.f32 %v3197_v6, %v487_v9  ;;  %2600 = vpow2.f32 %v696_v26  ;;  %v682_v48 = vsub.f32 0.0, %v666_v29  ;;  %vm647_vm2 = vcmp.le.f32.partialorder %v631_v60, 4.0 }
 0x12b   : > { %v2591_v10 = vpop.eup %2590  ;;  %v669_v55 = vmul.f32 %v3248_v36, %v3248_v36  ;;  %v704_v47 = vmul.f32 1.442695, %v683_v32  ;;  %v687_v26 = vsub.f32 0.0, %v671_v8  ;;  %v3293_v28 = vsub.f32 %v3197_v6, %v3027_v40 }
 0x12c   : > { %v2593_v43 = vpop.eup %2592  ;;  %v3140_v52 = vsel %vm770_vm12, %v2591_v10, 0.0  ;;  %v668_v10 = vmul.f32 %v3239_v27, %v3239_v27  ;;  %v632_v31 = vand.u32 2147483647, %v3217_v51  ;;  %v634_v59 = vand.u32 2147483647, %v3226_v18 }
 0x12d   : > { %912 = vperm.xlu1 %2508, %v3138_v50   ;;  %917 = vperm.xlu0 %2507, %v3140_v52   ;;  %v3144_v56 = vsel %vm771_vm13, %v2593_v43, 0.0  ;;  %v497_v14 = vpop.permute.xlu0 %496  ;;  %v685_v9 = vsub.f32 0.0, %v669_v55  ;;  %v675_v51 = vmul.f32 %v3293_v28, %v3293_v28  ;;  %v2812_v60 = vmov 5  }
 0x12e   : > { %v3255_v49 = vsub.f32 %v3197_v6, %v497_v14  ;;  %vm648_vm3 = vcmp.le.f32.partialorder %v632_v31, 4.0  ;;  %v635_v18 = vand.u32 2147483647, %v3233_v24  ;;  %vm3316_vm5 = vcmp.le.f32.partialorder %v634_v59, 4.0 }
 0x12f   : > { %v2595_v53 = vpop.eup %2594  ;;  %v708_v17 = vmul.f32 1.442695, %v685_v9 }
 0x130   : > { %v3146_v57 = vsel %vm772_vm14, %v2595_v53, 0.0  ;;  %v2597_v23 = vpop.eup %2596  ;;  %v698_v53 = vmul.f32 1.442695, %v680_v35  ;;  %v670_v0 = vmul.f32 %v3255_v49, %v3255_v49  ;;  %vm651_vm6 = vcmp.le.f32.partialorder %v635_v18, 4.0 }
 0x131   : > { %922 = vperm.xlu1 %2508, %v3144_v56   ;;  %927 = vperm.xlu0 %2507, %v3146_v57   ;;  %v507_v19 = vpop.permute.xlu0 %506 }
 0x132   : > { %v3271_v1 = vsub.f32 %v3197_v6, %v507_v19  ;;  %2602 = vpow2.f32 %v698_v53  ;;  %v2599_v7 = vpop.eup %2598  ;;  %v686_v37 = vsub.f32 0.0, %v670_v0  ;;  %v689_v53 = vsub.f32 0.0, %v673_v22 }
 0x133   : > { %v3295_v19 = vsel %vm646_vm1, %v2599_v7, 0.0 }
 0x134   : > { %v2601_v21 = vpop.eup %2600  ;;  %v672_v14 = vmul.f32 %v3271_v1, %v3271_v1  ;;  %v716_v7 = vmul.f32 1.442695, %v689_v53 }
 0x135   : > { %2509 = vset.pattern.permute.xlu1 %v2805_v3  ;;  %2510 = vset.pattern.permute.xlu0 %v2805_v3  ;;  %v757_v3 = vand.u32 2147483647, %v629_v25  ;;  %v517_v43 = vpop.permute.xlu0 %516  ;;  %v700_v25 = vmul.f32 1.442695, %v681_v46  ;;  %v3297_v29 = vsel %vm647_vm2, %v2601_v21, 0.0  ;;  %v691_v21 = vsub.f32 0.0, %v675_v51 }
 0x136   : > { %1000 = vperm.xlu1 %2509, %v3024_v38   ;;  %1004 = vperm.xlu0 %2510, %v3077_v39   ;;  %v3287_v15 = vsub.f32 %v3197_v6, %v517_v43  ;;  %v710_v46 = vmul.f32 1.442695, %v686_v37  ;;  %v633_v43 = vand.u32 2147483647, %v3222_v16  ;;  %v636_v37 = vand.u32 2147483647, %v3239_v27 }
 0x137   : > { %vm773_vm15 = vcmp.le.f32.partialorder %v757_v3, 4.0  ;;  %v684_v3 = vsub.f32 0.0, %v668_v10  ;;  %2604 = vpow2.f32 %v700_v25  ;;  %v688_v10 = vsub.f32 0.0, %v672_v14 }
 0x138   : > { %v3166_v61 = vsel %vm773_vm15, %v2597_v23, 0.0  ;;  %v702_v23 = vmul.f32 1.442695, %v682_v48  ;;  %v674_v40 = vmul.f32 %v3287_v15, %v3287_v15  ;;  %v712_v25 = vmul.f32 1.442695, %v687_v26 }
 0x139   : > { %v3282_v12 = vpop.permute.xlu0 %526  ;;  %v706_v13 = vmul.f32 1.442695, %v684_v3  ;;  %vm649_vm4 = vcmp.le.f32.partialorder %v633_v43, 4.0  ;;  %v637_v27 = vand.u32 2147483647, %v3248_v36  ;;  %vm652_vm7 = vcmp.le.f32.partialorder %v636_v37, 4.0 }
 0x13a   : > { %1008 = vperm.xlu1 %2509, %v3092_v54   ;;  %1016 = vperm.xlu0 %2510, %v3106_v5   ;;  %2606 = vpow2.f32 %v702_v23  ;;  %v690_v9 = vsub.f32 0.0, %v674_v40  ;;  %v638_v43 = vand.u32 2147483647, %v3255_v49  ;;  %v642_v37 = vand.u32 2147483647, %v3287_v15 }
 0x13b   : > { %2608 = vpow2.f32 %v704_v47  ;;  %v714_v47 = vmul.f32 1.442695, %v688_v10  ;;  %vm653_vm8 = vcmp.le.f32.partialorder %v637_v27, 4.0  ;;  %v643_v15 = vand.u32 2147483647, %v3293_v28 }
 0x13c   : > { %2610 = vpow2.f32 %v706_v13  ;;  %v2603_v3 = vpop.eup %2602  ;;  %vm654_vm9 = vcmp.le.f32.partialorder %v638_v43, 4.0  ;;  %v641_v13 = vand.u32 2147483647, %v3275_v34  ;;  %vm658_vm13 = vcmp.le.f32.partialorder %v642_v37, 4.0 }
 0x13d   : > { %2612 = vpow2.f32 %v708_v17  ;;  %v3322_v17 = vsel %vm648_vm3, %v2603_v3, 0.0  ;;  %v639_v3 = vand.u32 2147483647, %v3263_v58  ;;  %vm659_vm14 = vcmp.le.f32.partialorder %v643_v15, 4.0 }
 0x13e   : > { %1012 = vperm.xlu1 %2509, %v3103_v2   ;;  %1024 = vperm.xlu0 %2510, %v3116_v20   ;;  %2614 = vpow2.f32 %v710_v46  ;;  %vm657_vm12 = vcmp.le.f32.partialorder %v641_v13, 4.0  ;;  %v2813_v37 = vmov 6   ;;  %vm1926_vm2 = vcmask 261120  }
 0x13f   : > { %2616 = vpow2.f32 %v712_v25  ;;  %vm655_vm10 = vcmp.le.f32.partialorder %v639_v3, 4.0  ;;  %vm1928_vm3 = vcmask 392192  }
 0x140   : > { %2618 = vpow2.f32 %v714_v47 }
 0x141   : > { %v2605_v0 = vpop.eup %2604  ;;  %2620 = vpow2.f32 %v716_v7 }
 0x142   : > { %1020 = vperm.xlu1 %2509, %v3113_v11   ;;  %1032 = vperm.xlu0 %2510, %v3123_v33   ;;  %v3324_v22 = vsel %vm649_vm4, %v2605_v0, 0.0  ;;  %vm1930_vm4 = vcmask 523264  }
 0x144   : > { %v2607_v8 = vpop.eup %2606 }
 0x145   : > { %v2609_v14 = vpop.eup %2608  ;;  %v3333_v10 = vsel %vm3316_vm5, %v2607_v8, 0.0  ;;  %vm1932_vm5 = vcmask 654336  }
 0x146   : > { %1028 = vperm.xlu1 %2509, %v3121_v30   ;;  %1040 = vperm.xlu0 %2510, %v3133_v45   ;;  %v2611_v40 = vpop.eup %2610 }
 0x147   : > { %v2613_v25 = vpop.eup %2612  ;;  %v3343_v49 = vsel %vm652_vm7, %v2611_v40, 0.0  ;;  %vm1936_vm7 = vcmask 916480  }
 0x148   : > { %v3348_v47 = vsel %vm653_vm8, %v2613_v25, 0.0 }
 0x14a   : > { %1036 = vperm.xlu1 %2509, %v3131_v44   ;;  %1048 = vperm.xlu0 %2510, %v3140_v52  }
 0x14e   : > { %1044 = vperm.xlu1 %2509, %v3138_v50   ;;  %2511 = vset.pattern.permute.xlu0 %v2806_v4  ;;  %v2809_v4 = vmov 3  }
 0x14f   : > { %932 = vperm.xlu0 %2511, %v3166_v61  }
 0x152   : > { %1052 = vperm.xlu1 %2509, %v3144_v56  }
 0x153   : > { %2512 = vset.pattern.permute.xlu0 %v2808_v62 }
 0x154   : > { %1128 = vperm.xlu0 %2512, %v3024_v38  }
 0x156   : > { %1056 = vperm.xlu1 %2509, %v3146_v57  }
 0x158   : > { %1144 = vperm.xlu0 %2512, %v3106_v5  }
 0x15a   : > { %1060 = vperm.xlu1 %2509, %v3166_v61  }
 0x15c   : > { %1160 = vperm.xlu0 %2512, %v3123_v33  }
 0x15e   : > { %2513 = vset.pattern.permute.xlu1 %v2808_v62 }
 0x15f   : > { %1132 = vperm.xlu1 %2513, %v3077_v39  }
 0x160   : > { %1176 = vperm.xlu0 %2512, %v3140_v52  }
 0x163   : > { %2514 = vset.pattern.permute.xlu1 %v2809_v4 }
 0x164   : > { %1256 = vperm.xlu1 %2514, %v3024_v38   ;;  %2525 = vset.pattern.permute.xlu0 %v2809_v4 }
 0x165   : > { %1260 = vperm.xlu0 %2525, %v3077_v39  }
 0x168   : > { %2515 = vset.pattern.permute.xlu1 %v2808_v62 }
 0x169   : > { %1136 = vperm.xlu1 %2515, %v3092_v54   ;;  %1264 = vperm.xlu0 %2525, %v3092_v54  }
 0x16d   : > { %1140 = vperm.xlu1 %2515, %v3103_v2   ;;  %1276 = vperm.xlu0 %2525, %v3113_v11  }
 0x171   : > { %2516 = vset.pattern.permute.xlu1 %v2809_v4  ;;  %1280 = vperm.xlu0 %2525, %v3116_v20  }
 0x172   : > { %1268 = vperm.xlu1 %2516, %v3103_v2  }
 0x173   : > { %v858_v35 = vpop.permute.xlu1 %857 }
 0x174   : > { %v935_v32 = vmul.f32 %v858_v35, %v3295_v19  ;;  %v718_v35 = vmul.f32 1.442695, %v690_v9 }
 0x175   : > { %1292 = vperm.xlu0 %2525, %v3131_v44  }
 0x176   : > { %2517 = vset.pattern.permute.xlu1 %v2808_v62  ;;  %2622 = vpow2.f32 %v718_v35 }
 0x177   : > { %1148 = vperm.xlu1 %2517, %v3113_v11  }
 0x179   : > { %1296 = vperm.xlu0 %2525, %v3133_v45  }
 0x17b   : > { %2518 = vset.pattern.permute.xlu1 %v2809_v4 }
 0x17c   : > { %1272 = vperm.xlu1 %2518, %v3106_v5  }
 0x17d   : > { %1308 = vperm.xlu0 %2525, %v3144_v56  }
 0x180   : > { %2519 = vset.pattern.permute.xlu1 %v2808_v62 }
 0x181   : > { %1152 = vperm.xlu1 %2519, %v3116_v20   ;;  %1312 = vperm.xlu0 %2525, %v3146_v57  }
 0x185   : > { %1156 = vperm.xlu1 %2519, %v3121_v30   ;;  %2530 = vset.pattern.permute.xlu0 %v2811_v42 }
 0x186   : > { %1384 = vperm.xlu0 %2530, %v3024_v38  }
 0x189   : > { %2520 = vset.pattern.permute.xlu1 %v2809_v4 }
 0x18a   : > { %1284 = vperm.xlu1 %2520, %v3121_v30   ;;  %1400 = vperm.xlu0 %2530, %v3106_v5  }
 0x18e   : > { %2521 = vset.pattern.permute.xlu1 %v2808_v62  ;;  %1416 = vperm.xlu0 %2530, %v3123_v33  }
 0x18f   : > { %1164 = vperm.xlu1 %2521, %v3131_v44  }
 0x192   : > { %1432 = vperm.xlu0 %2530, %v3140_v52  }
 0x193   : > { %2522 = vset.pattern.permute.xlu1 %v2809_v4 }
 0x194   : > { %1288 = vperm.xlu1 %2522, %v3123_v33   ;;  %v863_v48 = vpop.permute.xlu0 %862 }
 0x195   : > { %v936_v55 = vmul.f32 %v863_v48, %v3297_v29  ;;  %v720_v48 = vmul.f32 1.442695, %v691_v21 }
 0x196   : > { %2543 = vset.pattern.permute.xlu0 %v2812_v60 }
 0x197   : > { %1516 = vperm.xlu0 %2543, %v3077_v39   ;;  %v951_v16 = vpack.c.bf16 %v936_v55, %v935_v32  ;;  %v3336_v32 = vsel %vm651_vm6, %v2609_v14, 0.0  ;;  %2624 = vpow2.f32 %v720_v48  ;;  %vm1934_vm6 = vcmask 785408  }
 0x198   : > { %v868_v23 = vpop.permute.xlu1 %867  ;;  %2523 = vset.pattern.permute.xlu1 %v2808_v62 }
 0x199   : > { %1168 = vperm.xlu1 %2523, %v3133_v45   ;;  %2232 = vmatpush3.bf16.msra.mxu0 %v951_v16  ;;  %v937_v31 = vmul.f32 %v868_v23, %v3322_v17  ;;  %v2615_v23 = vpop.eup %2614  ;;  %v640_v16 = vand.u32 2147483647, %v3271_v1 }
 0x19a   : > { %2233 = vmatprep.subr.bf16.mxu0 %v2807_v63  ;;  %v2617_v18 = vpop.eup %2616  ;;  %v3353_v21 = vsel %vm654_vm9, %v2615_v23, 0.0  ;;  %v3383_v23 = vsub.f32 %v3197_v6, %v3282_v12 }
 0x19b   : > { %1520 = vperm.xlu0 %2543, %v3092_v54   ;;  %v2619_v1 = vpop.eup %2618  ;;  %vm656_vm11 = vcmp.le.f32.partialorder %v640_v16, 4.0 }
 0x19c   : > { %v873_v24 = vpop.permute.xlu1 %872  ;;  %v878_v26 = vpop.permute.xlu0 %877  ;;  %v3365_v40 = vsel %vm656_vm11, %v2619_v1, 0.0 }
 0x19d   : > { %v938_v46 = vmul.f32 %v873_v24, %v3324_v22  ;;  %1172 = vperm.xlu1 %2523, %v3138_v50   ;;  %v939_v36 = vmul.f32 %v878_v26, %v3333_v10  ;;  %v2621_v24 = vpop.eup %2620  ;;  %v3360_v26 = vsel %vm655_vm10, %v2617_v18, 0.0 }
 0x19e   : > { %v2623_v34 = vpop.eup %2622  ;;  %v3370_v43 = vsel %vm657_vm12, %v2621_v24, 0.0 }
 0x19f   : > { %v952_v53 = vpack.c.bf16 %v938_v46, %v937_v31  ;;  %1532 = vperm.xlu0 %2543, %v3113_v11  }
 0x1a0   : > { %v883_v55 = vpop.permute.xlu1 %882  ;;  %v888_v59 = vpop.permute.xlu0 %887 }
 0x1a1   : > { %v940_v51 = vmul.f32 %v883_v55, %v3336_v32  ;;  %2524 = vset.pattern.permute.xlu1 %v2809_v4  ;;  %2234 = vmatpush3.bf16.msra.mxu0 %v952_v53  ;;  %v941_v58 = vmul.f32 %v888_v59, %v3343_v49  ;;  %v2625_v55 = vpop.eup %2624  ;;  %v3376_v59 = vsel %vm658_vm13, %v2623_v34, 0.0 }
 0x1a2   : > { %1300 = vperm.xlu1 %2524, %v3138_v50   ;;  %2235 = vmatprep.subr.bf16.mxu0 %v2807_v63  ;;  %v3379_v3 = vsel %vm659_vm14, %v2625_v55, 0.0 }
 0x1a3   : > { %v953_v0 = vpack.c.bf16 %v940_v51, %v939_v36  ;;  %1536 = vperm.xlu0 %2543, %v3116_v20  }
 0x1a4   : > { %v893_v9 = vpop.permute.xlu1 %892  ;;  %v898_v8 = vpop.permute.xlu0 %897 }
 0x1a5   : > { %v942_v7 = vmul.f32 %v893_v9, %v3348_v47  ;;  %2236 = vmatpush3.bf16.msra.mxu0 %v953_v0  ;;  %v943_v31 = vmul.f32 %v898_v8, %v3353_v21 }
 0x1a6   : > { %2526 = vset.pattern.permute.xlu1 %v2808_v62  ;;  %2237 = vmatprep.subr.bf16.mxu0 %v2807_v63 }
 0x1a7   : > { %v954_v14 = vpack.c.bf16 %v942_v7, %v941_v58  ;;  %1180 = vperm.xlu1 %2526, %v3144_v56   ;;  %1548 = vperm.xlu0 %2543, %v3131_v44   ;;  %v3394_v58 = vsub.f32 %v3197_v6, %v3029_v41  ;;  %v676_v7 = vmul.f32 %v3383_v23, %v3383_v23 }
 0x1a8   : > { %v903_v35 = vpop.permute.xlu1 %902  ;;  %v908_v27 = vpop.permute.xlu0 %907 }
 0x1a9   : > { %v944_v46 = vmul.f32 %v903_v35, %v3360_v26  ;;  %2238 = vmatpush3.bf16.msra.mxu0 %v954_v14  ;;  %v945_v25 = vmul.f32 %v908_v27, %v3365_v40  ;;  %v677_v8 = vmul.f32 %v3394_v58, %v3394_v58  ;;  %v692_v6 = vsub.f32 0.0, %v676_v7 }
 0x1aa   : > { %2239 = vmatprep.subr.bf16.mxu0 %v2807_v63 }
 0x1ab   : > { %v955_v48 = vpack.c.bf16 %v944_v46, %v943_v31  ;;  %2527 = vset.pattern.permute.xlu1 %v2809_v4  ;;  %1552 = vperm.xlu0 %2543, %v3133_v45   ;;  %v693_v35 = vsub.f32 0.0, %v677_v8  ;;  %v722_v46 = vmul.f32 1.442695, %v692_v6  ;;  %v2814_v8 = vmov 7  }
 0x1ac   : > { %v913_v53 = vpop.permute.xlu1 %912  ;;  %1304 = vperm.xlu1 %2527, %v3140_v52   ;;  %v918_v51 = vpop.permute.xlu0 %917 }
 0x1ad   : > { %v946_v36 = vmul.f32 %v913_v53, %v3370_v43  ;;  %2240 = vmatpush3.bf16.msra.mxu0 %v955_v48  ;;  %v947_v0 = vmul.f32 %v918_v51, %v3376_v59  ;;  %v724_v34 = vmul.f32 1.442695, %v693_v35  ;;  %2626 = vpow2.f32 %v722_v46 }
 0x1ae   : > { %2241 = vmatprep.subr.bf16.mxu0 %v2807_v63 }
 0x1af   : > { %v956_v28 = vpack.c.bf16 %v946_v36, %v945_v25  ;;  %1564 = vperm.xlu0 %2543, %v3144_v56   ;;  %2628 = vpow2.f32 %v724_v34 }
 0x1b0   : > { %v923_v16 = vpop.permute.xlu1 %922  ;;  %2528 = vset.pattern.permute.xlu1 %v2808_v62  ;;  %v3389_v18 = vpop.permute.xlu0 %927 }
 0x1b1   : > { %v948_v9 = vmul.f32 %v923_v16, %v3379_v3  ;;  %1184 = vperm.xlu1 %2528, %v3146_v57   ;;  %2242 = vmatpush3.bf16.msra.mxu0 %v956_v28 }
 0x1b2   : > { %2243 = vmatprep.subr.bf16.mxu0 %v2807_v63 }
 0x1b3   : > { %v957_v12 = vpack.c.bf16 %v948_v9, %v947_v0  ;;  %1568 = vperm.xlu0 %2543, %v3146_v57   ;;  %v644_v0 = vand.u32 2147483647, %v3383_v23  ;;  %v645_v23 = vand.u32 2147483647, %v3394_v58 }
 0x1b5   : > { %v1001_v62 = vpop.permute.xlu1 %1000  ;;  %1188 = vperm.xlu1 %2528, %v3166_v61   ;;  %2244 = vmatpush3.bf16.msra.mxu0 %v957_v12  ;;  %v1005_v13 = vpop.permute.xlu0 %1004  ;;  %vm660_vm15 = vcmp.le.f32.partialorder %v644_v0, 4.0  ;;  %vm661_vm1 = vcmp.le.f32.partialorder %v645_v23, 4.0  ;;  %v3455_v0 = vld [vmem:[%s2967_s0] sm:$0x7] }
 0x1b6   : > { %v1063_v1 = vmul.f32 %v1001_v62, %v3295_v19  ;;  %2245 = vmatprep.subr.bf16.mxu0 %v2807_v63  ;;  %v1064_v41 = vmul.f32 %v1005_v13, %v3297_v29 }
 0x1b7   : > { %2548 = vset.pattern.permute.xlu0 %v2813_v37  ;;  %v2627_v13 = vpop.eup %2626 }
 0x1b8   : > { %1640 = vperm.xlu0 %2548, %v3024_v38   ;;  %v1079_v24 = vpack.c.bf16 %v1064_v41, %v1063_v1 }
 0x1b9   : > { %v1009_v14 = vpop.permute.xlu1 %1008  ;;  %2529 = vset.pattern.permute.xlu1 %v2809_v4  ;;  %v1017_v31 = vpop.permute.xlu0 %1016 }
 0x1ba   : > { %1316 = vperm.xlu1 %2529, %v3166_v61   ;;  %2252 = vmatpush3.bf16.msra.mxu1 %v1079_v24  ;;  %v1065_v15 = vmul.f32 %v1009_v14, %v3322_v17  ;;  %v1067_v25 = vmul.f32 %v1017_v31, %v3333_v10  ;;  %v2629_v24 = vpop.eup %2628  ;;  %v3435_v31 = vsel %vm660_vm15, %v2627_v13, 0.0 }
 0x1bb   : > { %2253 = vmatprep.subr.bf16.mxu1 %v2807_v63  ;;  %v3441_v34 = vsel %vm661_vm1, %v2629_v24, 0.0 }
 0x1bc   : > { %1656 = vperm.xlu0 %2548, %v3106_v5  }
 0x1bd   : > { %v1013_v27 = vpop.permute.xlu1 %1012  ;;  %v1025_v53 = vpop.permute.xlu0 %1024 }
 0x1be   : > { %v1066_v48 = vmul.f32 %v1013_v27, %v3324_v22  ;;  %2531 = vset.pattern.permute.xlu1 %v2811_v42  ;;  %v1069_v9 = vmul.f32 %v1025_v53, %v3343_v49 }
 0x1bf   : > { %1388 = vperm.xlu1 %2531, %v3077_v39  }
 0x1c0   : > { %v1080_v4 = vpack.c.bf16 %v1066_v48, %v1065_v15  ;;  %1672 = vperm.xlu0 %2548, %v3123_v33   ;;  %v949_v48 = vmul.f32 %v3389_v18, %v3435_v31 }
 0x1c1   : > { %v1021_v55 = vpop.permute.xlu1 %1020  ;;  %v1033_v51 = vpop.permute.xlu0 %1032 }
 0x1c2   : > { %v1068_v36 = vmul.f32 %v1021_v55, %v3336_v32  ;;  %2254 = vmatpush3.bf16.msra.mxu1 %v1080_v4  ;;  %v1071_v41 = vmul.f32 %v1033_v51, %v3353_v21 }
 0x1c3   : > { %2532 = vset.pattern.permute.xlu1 %v2812_v60  ;;  %2255 = vmatprep.subr.bf16.mxu1 %v2807_v63 }
 0x1c4   : > { %v1081_v28 = vpack.c.bf16 %v1068_v36, %v1067_v25  ;;  %1512 = vperm.xlu1 %2532, %v3024_v38   ;;  %1688 = vperm.xlu0 %2548, %v3140_v52  }
 0x1c5   : > { %v1029_v16 = vpop.permute.xlu1 %1028  ;;  %v1041_v7 = vpop.permute.xlu0 %1040 }
 0x1c6   : > { %v1070_v12 = vmul.f32 %v1029_v16, %v3348_v47  ;;  %2256 = vmatpush3.bf16.msra.mxu1 %v1081_v28  ;;  %v1073_v58 = vmul.f32 %v1041_v7, %v3365_v40 }
 0x1c7   : > { %2257 = vmatprep.subr.bf16.mxu1 %v2807_v63 }
 0x1c8   : > { %v1082_v62 = vpack.c.bf16 %v1070_v12, %v1069_v9  ;;  %2533 = vset.pattern.permute.xlu1 %v2811_v42  ;;  %2561 = vset.pattern.permute.xlu0 %v2814_v8 }
 0x1c9   : > { %v1037_v1 = vpop.permute.xlu1 %1036  ;;  %1392 = vperm.xlu1 %2533, %v3092_v54   ;;  %1772 = vperm.xlu0 %2561, %v3077_v39   ;;  %v1049_v14 = vpop.permute.xlu0 %1048 }
 0x1ca   : > { %v1072_v6 = vmul.f32 %v1037_v1, %v3360_v26  ;;  %2258 = vmatpush3.bf16.msra.mxu1 %v1082_v62  ;;  %v1075_v25 = vmul.f32 %v1049_v14, %v3376_v59 }
 0x1cb   : > { %2259 = vmatprep.subr.bf16.mxu1 %v2807_v63 }
 0x1cc   : > { %v1083_v35 = vpack.c.bf16 %v1072_v6, %v1071_v41 }
 0x1cd   : > { %v1045_v46 = vpop.permute.xlu1 %1044  ;;  %1396 = vperm.xlu1 %2533, %v3103_v2   ;;  %1776 = vperm.xlu0 %2561, %v3092_v54  }
 0x1ce   : > { %v1074_v27 = vmul.f32 %v1045_v46, %v3370_v43  ;;  %2260 = vmatpush3.bf16.msra.mxu1 %v1083_v35  ;;  %v933_v15 = vpop.permute.xlu0 %932 }
 0x1cf   : > { %2261 = vmatprep.subr.bf16.mxu1 %v2807_v63  ;;  %v950_v4 = vmul.f32 %v933_v15, %v3441_v34 }
 0x1d0   : > { %v1084_v53 = vpack.c.bf16 %v1074_v27, %v1073_v58 }
 0x1d1   : > { %v1053_v55 = vpop.permute.xlu1 %1052  ;;  %2534 = vset.pattern.permute.xlu1 %v2812_v60  ;;  %v958_v36 = vpack.c.bf16 %v950_v4, %v949_v48  ;;  %1788 = vperm.xlu0 %2561, %v3113_v11  }
 0x1d2   : > { %v1076_v51 = vmul.f32 %v1053_v55, %v3379_v3  ;;  %1524 = vperm.xlu1 %2534, %v3103_v2   ;;  %2262 = vmatpush3.bf16.msra.mxu1 %v1084_v53 }
 0x1d3   : > { %2246 = vmatpush3.bf16.msra.mxu0 %v958_v36  ;;  %v1129_v18 = vpop.permute.xlu0 %1128  ;;  %2263 = vmatprep.subr.bf16.mxu1 %v2807_v63 }
 0x1d4   : > { %v1085_v28 = vpack.c.bf16 %v1076_v51, %v1075_v25  ;;  %2271 = vmatprep.subr.bf16.mxu0 %v2807_v63  ;;  %v1191_v41 = vmul.f32 %v1129_v18, %v3295_v19 }
 0x1d5   : > { %v1057_v16 = vpop.permute.xlu1 %1056  ;;  %1792 = vperm.xlu0 %2561, %v3116_v20  }
 0x1d6   : > { %2535 = vset.pattern.permute.xlu1 %v2811_v42  ;;  %2264 = vmatpush3.bf16.msra.mxu1 %v1085_v28  ;;  %v1077_v7 = vmul.f32 %v1057_v16, %v3435_v31 }
 0x1d7   : > { %1404 = vperm.xlu1 %2535, %v3113_v11   ;;  %v1145_v9 = vpop.permute.xlu0 %1144  ;;  %2265 = vmatprep.subr.bf16.mxu1 %v2807_v63 }
 0x1d8   : > { %2248 = vmatmul.mubr.bf16.vlgmr.msra.gmra.mrb[0].mxu0 %v3455_v0 }
 0x1d9   : > { %v1061_v12 = vpop.permute.xlu1 %1060  ;;  %2287 = vmatprep.mubr.msk.bf16.mxu0 %vm2810_vm0, %v2807_v63  ;;  %1804 = vperm.xlu0 %2561, %v3131_v44  }
 0x1da   : > { %v1078_v62 = vmul.f32 %v1061_v12, %v3441_v34 }
 0x1db   : > { %2536 = vset.pattern.permute.xlu1 %v2812_v60  ;;  %v3468_v13 = vpop.permute.xlu0 %1160 }
 0x1dc   : > { %v1086_v1 = vpack.c.bf16 %v1078_v62, %v1077_v7  ;;  %1528 = vperm.xlu1 %2536, %v3106_v5   ;;  %v1195_v7 = vmul.f32 %v1145_v9, %v3333_v10 }
 0x1dd   : > { %1808 = vperm.xlu0 %2561, %v3133_v45  }
 0x1de   : > { %v1133_v23 = vpop.permute.xlu1 %1132  ;;  %2266 = vmatpush3.bf16.msra.mxu1 %v1086_v1 }
 0x1df   : > { %v1192_v6 = vmul.f32 %v1133_v23, %v3297_v29  ;;  %2291 = vmatprep.subr.bf16.mxu1 %v2807_v63  ;;  %v3475_v14 = vpop.permute.xlu0 %1176 }
 0x1e0   : > { %2537 = vset.pattern.permute.xlu1 %v2811_v42 }
 0x1e1   : > { %v1207_v24 = vpack.c.bf16 %v1192_v6, %v1191_v41  ;;  %1408 = vperm.xlu1 %2537, %v3116_v20   ;;  %2268 = vmatmul.mubr.bf16.vlgmr.msra.gmra.mrb[0].mxu1 %v3455_v0 }
 0x1e2   : > { %1820 = vperm.xlu0 %2561, %v3144_v56   ;;  %2307 = vmatprep.mubr.msk.bf16.mxu1 %vm2810_vm0, %v2807_v63 }
 0x1e3   : > { %v1257_v35 = vpop.permute.xlu1 %1256  ;;  %2272 = vmatpush3.bf16.msra.mxu0 %v1207_v24 }
 0x1e4   : > { %v1319_v46 = vmul.f32 %v1257_v35, %v3295_v19  ;;  %2273 = vmatprep.subr.bf16.mxu0 %v2807_v63  ;;  %v1261_v58 = vpop.permute.xlu0 %1260 }
 0x1e5   : > { %1412 = vperm.xlu1 %2537, %v3121_v30   ;;  %v1320_v27 = vmul.f32 %v1261_v58, %v3297_v29 }
 0x1e6   : > { %1824 = vperm.xlu0 %2561, %v3146_v57  }
 0x1e7   : > { %v1335_v15 = vpack.c.bf16 %v1320_v27, %v1319_v46 }
 0x1e8   : > { %v1137_v48 = vpop.permute.xlu1 %1136  ;;  %v1265_v25 = vpop.permute.xlu0 %1264 }
 0x1e9   : > { %2538 = vset.pattern.permute.xlu1 %v2812_v60  ;;  %2292 = vmatpush3.bf16.msra.mxu1 %v1335_v15  ;;  %v1193_v4 = vmul.f32 %v1137_v48, %v3322_v17  ;;  %v1321_v28 = vmul.f32 %v1265_v25, %v3322_v17 }
 0x1ea   : > { %1540 = vperm.xlu1 %2538, %v3121_v30   ;;  %2293 = vmatprep.subr.bf16.mxu1 %v2807_v63 }
 0x1ec   : > { %v1141_v53 = vpop.permute.xlu1 %1140  ;;  %v1277_v1 = vpop.permute.xlu0 %1276 }
 0x1ed   : > { %v1194_v55 = vmul.f32 %v1141_v53, %v3324_v22  ;;  %v1324_v6 = vmul.f32 %v1277_v1, %v3336_v32 }
 0x1ee   : > { %2539 = vset.pattern.permute.xlu1 %v2811_v42 }
 0x1ef   : > { %v1208_v36 = vpack.c.bf16 %v1194_v55, %v1193_v4  ;;  %1420 = vperm.xlu1 %2539, %v3131_v44  }
 0x1f0   : > { %v1281_v15 = vpop.permute.xlu0 %1280 }
 0x1f1   : > { %v1269_v51 = vpop.permute.xlu1 %1268  ;;  %2274 = vmatpush3.bf16.msra.mxu0 %v1208_v36  ;;  %v1325_v4 = vmul.f32 %v1281_v15, %v3343_v49 }
 0x1f2   : > { %v1322_v18 = vmul.f32 %v1269_v51, %v3324_v22  ;;  %2275 = vmatprep.subr.bf16.mxu0 %v2807_v63  ;;  %v1199_v51 = vmul.f32 %v3468_v13, %v3353_v21 }
 0x1f3   : > { %2540 = vset.pattern.permute.xlu1 %v2812_v60 }
 0x1f4   : > { %v1336_v16 = vpack.c.bf16 %v1322_v18, %v1321_v28  ;;  %1544 = vperm.xlu1 %2540, %v3123_v33   ;;  %v1293_v18 = vpop.permute.xlu0 %1292 }
 0x1f6   : > { %v1149_v12 = vpop.permute.xlu1 %1148  ;;  %2294 = vmatpush3.bf16.msra.mxu1 %v1336_v16 }
 0x1f7   : > { %v1196_v62 = vmul.f32 %v1149_v12, %v3336_v32  ;;  %2295 = vmatprep.subr.bf16.mxu1 %v2807_v63 }
 0x1f8   : > { %2541 = vset.pattern.permute.xlu1 %v2811_v42  ;;  %v1297_v1 = vpop.permute.xlu0 %1296 }
 0x1f9   : > { %v1209_v23 = vpack.c.bf16 %v1196_v62, %v1195_v7  ;;  %1424 = vperm.xlu1 %2541, %v3133_v45   ;;  %v1328_v7 = vmul.f32 %v1293_v18, %v3360_v26 }
 0x1fb   : > { %v1273_v41 = vpop.permute.xlu1 %1272  ;;  %2276 = vmatpush3.bf16.msra.mxu0 %v1209_v23 }
 0x1fc   : > { %v1323_v24 = vmul.f32 %v1273_v41, %v3333_v10  ;;  %2277 = vmatprep.subr.bf16.mxu0 %v2807_v63  ;;  %v1309_v41 = vpop.permute.xlu0 %1308 }
 0x1fd   : > { %1428 = vperm.xlu1 %2541, %v3138_v50  }
 0x1fe   : > { %v1337_v9 = vpack.c.bf16 %v1324_v6, %v1323_v24 }
 0x200   : > { %v1153_v35 = vpop.permute.xlu1 %1152  ;;  %2296 = vmatpush3.bf16.msra.mxu1 %v1337_v9 }
 0x201   : > { %2542 = vset.pattern.permute.xlu1 %v2812_v60  ;;  %2297 = vmatprep.subr.bf16.mxu1 %v2807_v63  ;;  %v1197_v58 = vmul.f32 %v1153_v35, %v3343_v49 }
 0x202   : > { %1556 = vperm.xlu1 %2542, %v3138_v50  }
 0x204   : > { %v1157_v46 = vpop.permute.xlu1 %1156 }
 0x205   : > { %v1198_v27 = vmul.f32 %v1157_v46, %v3348_v47  ;;  %v1329_v46 = vmul.f32 %v1297_v1, %v3365_v40 }
 0x206   : > { %2544 = vset.pattern.permute.xlu1 %v2811_v42 }
 0x207   : > { %v1210_v48 = vpack.c.bf16 %v1198_v27, %v1197_v58  ;;  %1436 = vperm.xlu1 %2544, %v3144_v56   ;;  %v1313_v58 = vpop.permute.xlu0 %1312 }
 0x209   : > { %v1285_v53 = vpop.permute.xlu1 %1284  ;;  %2278 = vmatpush3.bf16.msra.mxu0 %v1210_v48  ;;  %v1203_v48 = vmul.f32 %v3475_v14, %v3376_v59 }
 0x20a   : > { %v1326_v55 = vmul.f32 %v1285_v53, %v3348_v47  ;;  %2279 = vmatprep.subr.bf16.mxu0 %v2807_v63 }
 0x20b   : > { %2545 = vset.pattern.permute.xlu1 %v2812_v60  ;;  %v1385_v53 = vpop.permute.xlu0 %1384 }
 0x20c   : > { %v1338_v25 = vpack.c.bf16 %v1326_v55, %v1325_v4  ;;  %1560 = vperm.xlu1 %2545, %v3140_v52  }
 0x20e   : > { %v1165_v36 = vpop.permute.xlu1 %1164  ;;  %2298 = vmatpush3.bf16.msra.mxu1 %v1338_v25  ;;  %v1332_v25 = vmul.f32 %v1309_v41, %v3379_v3 }
 0x20f   : > { %v1200_v28 = vmul.f32 %v1165_v36, %v3360_v26  ;;  %2299 = vmatprep.subr.bf16.mxu1 %v2807_v63  ;;  %v3553_v36 = vpop.permute.xlu0 %1400 }
 0x210   : > { %2546 = vset.pattern.permute.xlu1 %v2811_v42 }
 0x211   : > { %v1211_v16 = vpack.c.bf16 %v1200_v28, %v1199_v51  ;;  %1440 = vperm.xlu1 %2546, %v3146_v57  }
 0x213   : > { %v1289_v12 = vpop.permute.xlu1 %1288  ;;  %2280 = vmatpush3.bf16.msra.mxu0 %v1211_v16  ;;  %v3558_v28 = vpop.permute.xlu0 %1416 }
 0x214   : > { %v1327_v62 = vmul.f32 %v1289_v12, %v3353_v21  ;;  %2281 = vmatprep.subr.bf16.mxu0 %v2807_v63 }
 0x215   : > { %1444 = vperm.xlu1 %2546, %v3166_v61  }
 0x216   : > { %v1339_v13 = vpack.c.bf16 %v1328_v7, %v1327_v62  ;;  %v1333_v62 = vmul.f32 %v1313_v58, %v3435_v31 }
 0x218   : > { %v1169_v23 = vpop.permute.xlu1 %1168  ;;  %2300 = vmatpush3.bf16.msra.mxu1 %v1339_v13 }
 0x219   : > { %2547 = vset.pattern.permute.xlu1 %v2812_v60  ;;  %2301 = vmatprep.subr.bf16.mxu1 %v2807_v63  ;;  %v1201_v6 = vmul.f32 %v1169_v23, %v3365_v40  ;;  %v1447_v23 = vmul.f32 %v1385_v53, %v3295_v19 }
 0x21a   : > { %1572 = vperm.xlu1 %2547, %v3166_v61  }
 0x21c   : > { %v1173_v42 = vpop.permute.xlu1 %1172 }
 0x21d   : > { %v1202_v24 = vmul.f32 %v1173_v42, %v3370_v43 }
 0x21e   : > { %2549 = vset.pattern.permute.xlu1 %v2813_v37 }
 0x21f   : > { %v1212_v9 = vpack.c.bf16 %v1202_v24, %v1201_v6  ;;  %1644 = vperm.xlu1 %2549, %v3077_v39  }
 0x221   : > { %v1301_v35 = vpop.permute.xlu1 %1300  ;;  %2282 = vmatpush3.bf16.msra.mxu0 %v1212_v9 }
 0x222   : > { %v1330_v60 = vmul.f32 %v1301_v35, %v3370_v43  ;;  %2283 = vmatprep.subr.bf16.mxu0 %v2807_v63 }
 0x223   : > { %2550 = vset.pattern.permute.xlu1 %v2814_v8 }
 0x224   : > { %v1340_v27 = vpack.c.bf16 %v1330_v60, %v1329_v46  ;;  %1768 = vperm.xlu1 %2550, %v3024_v38  }
 0x226   : > { %v1181_v15 = vpop.permute.xlu1 %1180  ;;  %2302 = vmatpush3.bf16.msra.mxu1 %v1340_v27 }
 0x227   : > { %v1204_v39 = vmul.f32 %v1181_v15, %v3379_v3  ;;  %2303 = vmatprep.subr.bf16.mxu1 %v2807_v63 }
 0x228   : > { %2551 = vset.pattern.permute.xlu1 %v2813_v37 }
 0x229   : > { %v1213_v4 = vpack.c.bf16 %v1204_v39, %v1203_v48  ;;  %1648 = vperm.xlu1 %2551, %v3092_v54  }
 0x22b   : > { %v1305_v55 = vpop.permute.xlu1 %1304  ;;  %2284 = vmatpush3.bf16.msra.mxu0 %v1213_v4 }
 0x22c   : > { %v1331_v38 = vmul.f32 %v1305_v55, %v3376_v59  ;;  %2285 = vmatprep.subr.bf16.mxu0 %v2807_v63  ;;  %v1451_v55 = vmul.f32 %v3553_v36, %v3333_v10 }
 0x22d   : > { %1652 = vperm.xlu1 %2551, %v3103_v2  }
 0x22e   : > { %v1341_v14 = vpack.c.bf16 %v1332_v25, %v1331_v38 }
 0x230   : > { %v1185_v51 = vpop.permute.xlu1 %1184  ;;  %2304 = vmatpush3.bf16.msra.mxu1 %v1341_v14 }
 0x231   : > { %2552 = vset.pattern.permute.xlu1 %v2814_v8  ;;  %2305 = vmatprep.subr.bf16.mxu1 %v2807_v63  ;;  %v1205_v18 = vmul.f32 %v1185_v51, %v3435_v31 }
 0x232   : > { %1780 = vperm.xlu1 %2552, %v3103_v2   ;;  %v3567_v2 = vpop.permute.xlu0 %1432 }
 0x234   : > { %v1189_v54 = vpop.permute.xlu1 %1188 }
 0x235   : > { %v1206_v16 = vmul.f32 %v1189_v54, %v3441_v34 }
 0x236   : > { %2553 = vset.pattern.permute.xlu1 %v2813_v37  ;;  %v1517_v41 = vpop.permute.xlu0 %1516 }
 0x237   : > { %v1214_v12 = vpack.c.bf16 %v1206_v16, %v1205_v18  ;;  %1660 = vperm.xlu1 %2553, %v3113_v11   ;;  %v1576_v24 = vmul.f32 %v1517_v41, %v3297_v29 }
 0x239   : > { %v1317_v7 = vpop.permute.xlu1 %1316  ;;  %2286 = vmatpush3.bf16.msra.mxu0 %v1214_v12 }
 0x23a   : > { %v1334_v13 = vmul.f32 %v1317_v7, %v3441_v34  ;;  %2311 = vmatprep.subr.bf16.mxu0 %v2807_v63  ;;  %v1521_v27 = vpop.permute.xlu0 %1520 }
 0x23b   : > { %2554 = vset.pattern.permute.xlu1 %v2814_v8  ;;  %v1577_v39 = vmul.f32 %v1521_v27, %v3322_v17 }
 0x23c   : > { %v1342_v1 = vpack.c.bf16 %v1334_v13, %v1333_v62  ;;  %1784 = vperm.xlu1 %2554, %v3106_v5   ;;  %2288 = vmatmul.mubr.bf16.vlgmr.msra.gmra.mrb[4].mxu0 %v3455_v0 }
 0x23d   : > { %2327 = vmatprep.mubr.msk.bf16.mxu0 %vm2810_vm0, %v2807_v63 }
 0x23e   : > { %v1389_v11 = vpop.permute.xlu1 %1388  ;;  %2306 = vmatpush3.bf16.msra.mxu1 %v1342_v1  ;;  %v1533_v25 = vpop.permute.xlu0 %1532 }
 0x23f   : > { %v1448_v42 = vmul.f32 %v1389_v11, %v3297_v29  ;;  %2331 = vmatprep.subr.bf16.mxu1 %v2807_v63  ;;  %v1580_v51 = vmul.f32 %v1533_v25, %v3336_v32 }
 0x240   : > { %2555 = vset.pattern.permute.xlu1 %v2813_v37 }
 0x241   : > { %v1463_v6 = vpack.c.bf16 %v1448_v42, %v1447_v23  ;;  %1664 = vperm.xlu1 %2555, %v3116_v20   ;;  %2308 = vmatmul.mubr.bf16.vlgmr.msra.gmra.mrb[4].mxu1 %v3455_v0  ;;  %v1455_v23 = vmul.f32 %v3558_v28, %v3353_v21 }
 0x242   : > { %2347 = vmatprep.mubr.msk.bf16.mxu1 %vm2810_vm0, %v2807_v63  ;;  %v1537_v12 = vpop.permute.xlu0 %1536 }
 0x243   : > { %v1513_v5 = vpop.permute.xlu1 %1512  ;;  %2312 = vmatpush3.bf16.msra.mxu0 %v1463_v6  ;;  %v1581_v13 = vmul.f32 %v1537_v12, %v3343_v49 }
 0x244   : > { %v1575_v9 = vmul.f32 %v1513_v5, %v3295_v19  ;;  %2313 = vmatprep.subr.bf16.mxu0 %v2807_v63 }
 0x245   : > { %1668 = vperm.xlu1 %2555, %v3121_v30  }
 0x246   : > { %v1591_v35 = vpack.c.bf16 %v1576_v24, %v1575_v9  ;;  %v1549_v42 = vpop.permute.xlu0 %1548 }
 0x247   : > { %v1584_v5 = vmul.f32 %v1549_v42, %v3360_v26 }
 0x248   : > { %v1393_v46 = vpop.permute.xlu1 %1392  ;;  %2332 = vmatpush3.bf16.msra.mxu1 %v1591_v35 }
 0x249   : > { %2556 = vset.pattern.permute.xlu1 %v2814_v8  ;;  %2333 = vmatprep.subr.bf16.mxu1 %v2807_v63  ;;  %v1449_v60 = vmul.f32 %v1393_v46, %v3322_v17 }
 0x24a   : > { %1796 = vperm.xlu1 %2556, %v3121_v30   ;;  %v1553_v24 = vpop.permute.xlu0 %1552 }
 0x24c   : > { %v1397_v20 = vpop.permute.xlu1 %1396 }
 0x24d   : > { %v1450_v58 = vmul.f32 %v1397_v20, %v3324_v22 }
 0x24e   : > { %2557 = vset.pattern.permute.xlu1 %v2813_v37 }
 0x24f   : > { %v1464_v15 = vpack.c.bf16 %v1450_v58, %v1449_v60  ;;  %1676 = vperm.xlu1 %2557, %v3131_v44   ;;  %v1585_v58 = vmul.f32 %v1553_v24, %v3365_v40 }
 0x251   : > { %v1525_v48 = vpop.permute.xlu1 %1524  ;;  %2314 = vmatpush3.bf16.msra.mxu0 %v1464_v15 }
 0x252   : > { %v1578_v53 = vmul.f32 %v1525_v48, %v3324_v22  ;;  %2315 = vmatprep.subr.bf16.mxu0 %v2807_v63 }
 0x253   : > { %2558 = vset.pattern.permute.xlu1 %v2814_v8 }
 0x254   : > { %v1592_v30 = vpack.c.bf16 %v1578_v53, %v1577_v39  ;;  %1800 = vperm.xlu1 %2558, %v3123_v33  }
 0x256   : > { %v1405_v4 = vpop.permute.xlu1 %1404  ;;  %2334 = vmatpush3.bf16.msra.mxu1 %v1592_v30 }
 0x257   : > { %v1452_v44 = vmul.f32 %v1405_v4, %v3336_v32  ;;  %2335 = vmatprep.subr.bf16.mxu1 %v2807_v63 }
 0x258   : > { %2559 = vset.pattern.permute.xlu1 %v2813_v37 }
 0x259   : > { %v1465_v38 = vpack.c.bf16 %v1452_v44, %v1451_v55  ;;  %1680 = vperm.xlu1 %2559, %v3133_v45  }
 0x25b   : > { %v1529_v14 = vpop.permute.xlu1 %1528  ;;  %2316 = vmatpush3.bf16.msra.mxu0 %v1465_v38 }
 0x25c   : > { %v1579_v33 = vmul.f32 %v1529_v14, %v3333_v10  ;;  %2317 = vmatprep.subr.bf16.mxu0 %v2807_v63 }
 0x25d   : > { %1684 = vperm.xlu1 %2559, %v3138_v50  }
 0x25e   : > { %v1593_v36 = vpack.c.bf16 %v1580_v51, %v1579_v33 }
 0x260   : > { %v1409_v54 = vpop.permute.xlu1 %1408  ;;  %2336 = vmatpush3.bf16.msra.mxu1 %v1593_v36 }
 0x261   : > { %2560 = vset.pattern.permute.xlu1 %v2814_v8  ;;  %2337 = vmatprep.subr.bf16.mxu1 %v2807_v63  ;;  %v1453_v18 = vmul.f32 %v1409_v54, %v3343_v49 }
 0x262   : > { %1812 = vperm.xlu1 %2560, %v3138_v50  }
 0x264   : > { %v1413_v45 = vpop.permute.xlu1 %1412 }
 0x265   : > { %v1454_v16 = vmul.f32 %v1413_v45, %v3348_v47 }
 0x266   : > { %2562 = vset.pattern.permute.xlu1 %v2813_v37 }
 0x267   : > { %v1466_v7 = vpack.c.bf16 %v1454_v16, %v1453_v18  ;;  %1692 = vperm.xlu1 %2562, %v3144_v56  }
 0x269   : > { %v1541_v62 = vpop.permute.xlu1 %1540  ;;  %2318 = vmatpush3.bf16.msra.mxu0 %v1466_v7 }
 0x26a   : > { %v1582_v1 = vmul.f32 %v1541_v62, %v3348_v47  ;;  %2319 = vmatprep.subr.bf16.mxu0 %v2807_v63 }
 0x26b   : > { %2563 = vset.pattern.permute.xlu1 %v2814_v8 }
 0x26c   : > { %v1594_v50 = vpack.c.bf16 %v1582_v1, %v1581_v13  ;;  %1816 = vperm.xlu1 %2563, %v3140_v52  }
 0x26e   : > { %v1421_v11 = vpop.permute.xlu1 %1420  ;;  %2338 = vmatpush3.bf16.msra.mxu1 %v1594_v50 }
 0x26f   : > { %v1456_v56 = vmul.f32 %v1421_v11, %v3360_v26  ;;  %2339 = vmatprep.subr.bf16.mxu1 %v2807_v63 }
 0x270   : > { %2564 = vset.pattern.permute.xlu1 %v2813_v37  ;;  %v1565_v37 = vpop.permute.xlu0 %1564 }
 0x271   : > { %v1467_v41 = vpack.c.bf16 %v1456_v56, %v1455_v23  ;;  %1696 = vperm.xlu1 %2564, %v3146_v57   ;;  %v1588_v55 = vmul.f32 %v1565_v37, %v3379_v3 }
 0x273   : > { %v1545_v6 = vpop.permute.xlu1 %1544  ;;  %2320 = vmatpush3.bf16.msra.mxu0 %v1467_v41 }
 0x274   : > { %v1583_v52 = vmul.f32 %v1545_v6, %v3353_v21  ;;  %2321 = vmatprep.subr.bf16.mxu0 %v2807_v63 }
 0x275   : > { %1700 = vperm.xlu1 %2564, %v3166_v61  }
 0x276   : > { %v1595_v28 = vpack.c.bf16 %v1584_v5, %v1583_v52 }
 0x278   : > { %v1425_v9 = vpop.permute.xlu1 %1424  ;;  %2340 = vmatpush3.bf16.msra.mxu1 %v1595_v28 }
 0x279   : > { %2565 = vset.pattern.permute.xlu1 %v2814_v8  ;;  %2341 = vmatprep.subr.bf16.mxu1 %v2807_v63  ;;  %v1457_v35 = vmul.f32 %v1425_v9, %v3365_v40  ;;  %v1569_v8 = vpop.permute.xlu0 %1568 }
 0x27a   : > { %1828 = vperm.xlu1 %2565, %v3166_v61   ;;  %v1459_v61 = vmul.f32 %v3567_v2, %v3376_v59  ;;  %v1589_v18 = vmul.f32 %v1569_v8, %v3435_v31 }
 0x27c   : > { %v1429_v57 = vpop.permute.xlu1 %1428 }
 0x27d   : > { %v1458_v46 = vmul.f32 %v1429_v57, %v3370_v43  ;;  %v1641_v53 = vpop.permute.xlu0 %1640 }
 0x27e   : > { %v1703_v13 = vmul.f32 %v1641_v53, %v3295_v19 }
 0x27f   : > { %v1468_v20 = vpack.c.bf16 %v1458_v46, %v1457_v35 }
 0x281   : > { %v1557_v60 = vpop.permute.xlu1 %1556  ;;  %2322 = vmatpush3.bf16.msra.mxu0 %v1468_v20  ;;  %v1657_v38 = vpop.permute.xlu0 %1656 }
 0x282   : > { %v1586_v27 = vmul.f32 %v1557_v60, %v3370_v43  ;;  %2323 = vmatprep.subr.bf16.mxu0 %v2807_v63 }
 0x284   : > { %v1596_v15 = vpack.c.bf16 %v1586_v27, %v1585_v58 }
 0x285   : > { %v3646_v51 = vpop.permute.xlu0 %1672 }
 0x286   : > { %v1437_v48 = vpop.permute.xlu1 %1436  ;;  %2342 = vmatpush3.bf16.msra.mxu1 %v1596_v15 }
 0x287   : > { %v1460_v39 = vmul.f32 %v1437_v48, %v3379_v3  ;;  %2343 = vmatprep.subr.bf16.mxu1 %v2807_v63  ;;  %v1707_v48 = vmul.f32 %v1657_v38, %v3333_v10 }
 0x289   : > { %v1469_v30 = vpack.c.bf16 %v1460_v39, %v1459_v61  ;;  %v3653_v12 = vpop.permute.xlu0 %1688 }
 0x28b   : > { %v1561_v4 = vpop.permute.xlu1 %1560  ;;  %2324 = vmatpush3.bf16.msra.mxu0 %v1469_v30 }
 0x28c   : > { %v1587_v44 = vmul.f32 %v1561_v4, %v3376_v59  ;;  %2325 = vmatprep.subr.bf16.mxu0 %v2807_v63 }
 0x28d   : > { %v1773_v50 = vpop.permute.xlu0 %1772 }
 0x28e   : > { %v1597_v25 = vpack.c.bf16 %v1588_v55, %v1587_v44  ;;  %v1832_v56 = vmul.f32 %v1773_v50, %v3297_v29 }
 0x290   : > { %v1441_v14 = vpop.permute.xlu1 %1440  ;;  %2344 = vmatpush3.bf16.msra.mxu1 %v1597_v25 }
 0x291   : > { %2345 = vmatprep.subr.bf16.mxu1 %v2807_v63  ;;  %v1461_v33 = vmul.f32 %v1441_v14, %v3435_v31 }
 0x294   : > { %v1445_v2 = vpop.permute.xlu1 %1444 }
 0x295   : > { %v1462_v36 = vmul.f32 %v1445_v2, %v3441_v34 }
 0x297   : > { %v1470_v54 = vpack.c.bf16 %v1462_v36, %v1461_v33 }
 0x299   : > { %v1573_v45 = vpop.permute.xlu1 %1572  ;;  %2326 = vmatpush3.bf16.msra.mxu0 %v1470_v54 }
 0x29a   : > { %v1590_v16 = vmul.f32 %v1573_v45, %v3441_v34  ;;  %2351 = vmatprep.subr.bf16.mxu0 %v2807_v63 }
 0x29c   : > { %v1598_v7 = vpack.c.bf16 %v1590_v16, %v1589_v18  ;;  %2328 = vmatmul.mubr.bf16.vlgmr.msra.gmra.mrb[8].mxu0 %v3455_v0  ;;  %v1711_v18 = vmul.f32 %v3646_v51, %v3353_v21 }
 0x29d   : > { %2367 = vmatprep.mubr.msk.bf16.mxu0 %vm2810_vm0, %v2807_v63 }
 0x29e   : > { %v1645_v62 = vpop.permute.xlu1 %1644  ;;  %2346 = vmatpush3.bf16.msra.mxu1 %v1598_v7 }
 0x29f   : > { %v1704_v1 = vmul.f32 %v1645_v62, %v3297_v29  ;;  %2371 = vmatprep.subr.bf16.mxu1 %v2807_v63  ;;  %v1777_v29 = vpop.permute.xlu0 %1776 }
 0x2a0   : > { %v1833_v46 = vmul.f32 %v1777_v29, %v3322_v17 }
 0x2a1   : > { %v1719_v11 = vpack.c.bf16 %v1704_v1, %v1703_v13  ;;  %2348 = vmatmul.mubr.bf16.vlgmr.msra.gmra.mrb[8].mxu1 %v3455_v0 }
 0x2a2   : > { %2387 = vmatprep.mubr.msk.bf16.mxu1 %vm2810_vm0, %v2807_v63  ;;  %vm1924_vm0 = vcmask 130048  }
 0x2a3   : > { %v1769_v23 = vpop.permute.xlu1 %1768  ;;  %2352 = vmatpush3.bf16.msra.mxu0 %v1719_v11 }
 0x2a4   : > { %v1831_v42 = vmul.f32 %v1769_v23, %v3295_v19  ;;  %2353 = vmatprep.subr.bf16.mxu0 %v2807_v63 }
 0x2a6   : > { %v1847_v41 = vpack.c.bf16 %v1832_v56, %v1831_v42 }
 0x2a8   : > { %v1649_v6 = vpop.permute.xlu1 %1648  ;;  %2372 = vmatpush3.bf16.msra.mxu1 %v1847_v41 }
 0x2a9   : > { %2373 = vmatprep.subr.bf16.mxu1 %v2807_v63  ;;  %v1705_v24 = vmul.f32 %v1649_v6, %v3322_v17  ;;  %v1789_v17 = vpop.permute.xlu0 %1788 }
 0x2aa   : > { %v1836_v30 = vmul.f32 %v1789_v17, %v3336_v32 }
 0x2ab   : > { %v3668_v5 = vpop.f32.mrb[0].mxu0 }
 0x2ac   : > { %v1653_v52 = vpop.permute.xlu1 %1652  ;;  %v2249_v28 = vpop.f32.mrb[1].mxu0 }
 0x2ad   : > { %v1706_v9 = vmul.f32 %v1653_v52, %v3324_v22  ;;  %v996_v57 = vpop.f32.mrb[2].mxu0  ;;  %v1793_v2 = vpop.permute.xlu0 %1792  ;;  %v1715_v28 = vmul.f32 %v3653_v12, %v3376_v59 }
 0x2ae   : > { %v2250_v37 = vpop.f32.mrb[3].mxu0 }
 0x2af   : > { %v1720_v35 = vpack.c.bf16 %v1706_v9, %v1705_v24 }
 0x2b1   : > { %v1781_v19 = vpop.permute.xlu1 %1780  ;;  %2354 = vmatpush3.bf16.msra.mxu0 %v1720_v35  ;;  %v1805_v7 = vpop.permute.xlu0 %1804 }
 0x2b2   : > { %v1834_v20 = vmul.f32 %v1781_v19, %v3324_v22  ;;  %2355 = vmatprep.subr.bf16.mxu0 %v2807_v63 }
 0x2b4   : > { %v1848_v60 = vpack.c.bf16 %v1834_v20, %v1833_v46  ;;  %v1121_v58 = vpop.f32.mrb[0].mxu1 }
 0x2b5   : > { %1897 = vrot.lane.b32.xlu0 %v1121_v58, %s2815_s30  ;;  %v2269_v27 = vpop.f32.mrb[1].mxu1  ;;  %v1809_v56 = vpop.permute.xlu0 %1808 }
 0x2b6   : > { %v1661_v8 = vpop.permute.xlu1 %1660  ;;  %2374 = vmatpush3.bf16.msra.mxu1 %v1848_v60  ;;  %v1124_v15 = vpop.f32.mrb[2].mxu1 }
 0x2b7   : > { %v1708_v61 = vmul.f32 %v1661_v8, %v3336_v32  ;;  %2375 = vmatprep.subr.bf16.mxu1 %v2807_v63  ;;  %v2270_v39 = vpop.f32.mrb[3].mxu1  ;;  %v1837_v32 = vmul.f32 %v1793_v2, %v3343_v49 }
 0x2b9   : > { %v1721_v53 = vpack.c.bf16 %v1708_v61, %v1707_v48  ;;  %v1821_v9 = vpop.permute.xlu0 %1820 }
 0x2bb   : > { %v1785_v22 = vpop.permute.xlu1 %1784  ;;  %2356 = vmatpush3.bf16.msra.mxu0 %v1721_v53 }
 0x2bc   : > { %v1835_v4 = vmul.f32 %v1785_v22, %v3333_v10  ;;  %2357 = vmatprep.subr.bf16.mxu0 %v2807_v63 }
 0x2bd   : > { %v1825_v20 = vpop.permute.xlu0 %1824 }
 0x2be   : > { %v1849_v55 = vpack.c.bf16 %v1836_v30, %v1835_v4 }
 0x2c0   : > { %v1665_v44 = vpop.permute.xlu1 %1664  ;;  %2376 = vmatpush3.bf16.msra.mxu1 %v1849_v55 }
 0x2c1   : > { %2377 = vmatprep.subr.bf16.mxu1 %v2807_v63  ;;  %v1709_v38 = vmul.f32 %v1665_v44, %v3343_v49  ;;  %v1840_v49 = vmul.f32 %v1805_v7, %v3360_v26 }
 0x2c4   : > { %v1669_v25 = vpop.permute.xlu1 %1668 }
 0x2c5   : > { %v1710_v14 = vmul.f32 %v1669_v25, %v3348_v47 }
 0x2c7   : > { %v1722_v33 = vpack.c.bf16 %v1710_v14, %v1709_v38 }
 0x2c9   : > { %v1797_v36 = vpop.permute.xlu1 %1796  ;;  %2358 = vmatpush3.bf16.msra.mxu0 %v1722_v33 }
 0x2ca   : > { %v1838_v10 = vmul.f32 %v1797_v36, %v3348_v47  ;;  %2359 = vmatprep.subr.bf16.mxu0 %v2807_v63 }
 0x2cc   : > { %v1850_v54 = vpack.c.bf16 %v1838_v10, %v1837_v32 }
 0x2ce   : > { %v1677_v45 = vpop.permute.xlu1 %1676  ;;  %2378 = vmatpush3.bf16.msra.mxu1 %v1850_v54 }
 0x2cf   : > { %v1712_v16 = vmul.f32 %v1677_v45, %v3360_v26  ;;  %2379 = vmatprep.subr.bf16.mxu1 %v2807_v63  ;;  %v1841_v26 = vmul.f32 %v1809_v56, %v3365_v40 }
 0x2d1   : > { %v1723_v62 = vpack.c.bf16 %v1712_v16, %v1711_v18 }
 0x2d3   : > { %v1801_v13 = vpop.permute.xlu1 %1800  ;;  %2360 = vmatpush3.bf16.msra.mxu0 %v1723_v62 }
 0x2d4   : > { %v1839_v47 = vmul.f32 %v1801_v13, %v3353_v21  ;;  %2361 = vmatprep.subr.bf16.mxu0 %v2807_v63 }
 0x2d6   : > { %v1851_v1 = vpack.c.bf16 %v1840_v49, %v1839_v47 }
 0x2d8   : > { %v1681_v50 = vpop.permute.xlu1 %1680  ;;  %2380 = vmatpush3.bf16.msra.mxu1 %v1851_v1 }
 0x2d9   : > { %2381 = vmatprep.subr.bf16.mxu1 %v2807_v63  ;;  %v1713_v11 = vmul.f32 %v1681_v50, %v3365_v40  ;;  %v1844_v40 = vmul.f32 %v1821_v9, %v3379_v3 }
 0x2dc   : > { %v1685_v51 = vpop.permute.xlu1 %1684 }
 0x2dd   : > { %v1714_v23 = vmul.f32 %v1685_v51, %v3370_v43  ;;  %v1895_v51 = vld [vmem:[#allocation2] sm:$0x1f] }
 0x2df   : > { %v1724_v42 = vpack.c.bf16 %v1714_v23, %v1713_v11 }
 0x2e1   : > { %v1813_v41 = vpop.permute.xlu1 %1812  ;;  %2362 = vmatpush3.bf16.msra.mxu0 %v1724_v42 }
 0x2e2   : > { %v1842_v21 = vmul.f32 %v1813_v41, %v3370_v43  ;;  %2363 = vmatprep.subr.bf16.mxu0 %v2807_v63 }
 0x2e4   : > { %v1852_v6 = vpack.c.bf16 %v1842_v21, %v1841_v26 }
 0x2e6   : > { %v1693_v52 = vpop.permute.xlu1 %1692  ;;  %2382 = vmatpush3.bf16.msra.mxu1 %v1852_v6 }
 0x2e7   : > { %v1716_v24 = vmul.f32 %v1693_v52, %v3379_v3  ;;  %2383 = vmatprep.subr.bf16.mxu1 %v2807_v63  ;;  %v1845_v3 = vmul.f32 %v1825_v20, %v3435_v31 }
 0x2e9   : > { %v1725_v57 = vpack.c.bf16 %v1716_v24, %v1715_v28 }
 0x2eb   : > { %v1817_v37 = vpop.permute.xlu1 %1816  ;;  %2364 = vmatpush3.bf16.msra.mxu0 %v1725_v57 }
 0x2ec   : > { %v1843_v43 = vmul.f32 %v1817_v37, %v3376_v59  ;;  %2365 = vmatprep.subr.bf16.mxu0 %v2807_v63 }
 0x2ee   : > { %v1853_v29 = vpack.c.bf16 %v1844_v40, %v1843_v43 }
 0x2f0   : > { %v1697_v35 = vpop.permute.xlu1 %1696  ;;  %2384 = vmatpush3.bf16.msra.mxu1 %v1853_v29 }
 0x2f1   : > { %2385 = vmatprep.subr.bf16.mxu1 %v2807_v63  ;;  %v1717_v19 = vmul.f32 %v1697_v35, %v3435_v31 }
 0x2f4   : > { %v1701_v12 = vpop.permute.xlu1 %1700 }
 0x2f5   : > { %v1718_v46 = vmul.f32 %v1701_v12, %v3441_v34 }
 0x2f7   : > { %v1726_v60 = vpack.c.bf16 %v1718_v46, %v1717_v19 }
 0x2f9   : > { %v1829_v58 = vpop.permute.xlu1 %1828  ;;  %2366 = vmatpush3.bf16.msra.mxu0 %v1726_v60 }
 0x2fa   : > { %v1846_v59 = vmul.f32 %v1829_v58, %v3441_v34 }
 0x2fc   : > { %v1854_v27 = vpack.c.bf16 %v1846_v59, %v1845_v3  ;;  %2368 = vmatmul.mubr.bf16.vlgmr.msra.gmra.mrb[12].mxu0 %v3455_v0 }
 0x2fe   : > { %2386 = vmatpush3.bf16.msra.mxu1 %v1854_v27 }
 0x301   : > { %2388 = vmatmul.mubr.bf16.vlgmr.msra.gmra.mrb[12].mxu1 %v3455_v0 }
 0x30f   : > { %v1249_v63 = vpop.f32.mrb[4].mxu0 }
 0x310   : > { %1901 = vrot.lane.b32.xlu1 %v1249_v63, %s2816_s7  ;;  %v2289_v8 = vpop.f32.mrb[5].mxu0 }
 0x311   : > { %v1252_v15 = vpop.f32.mrb[6].mxu0 }
 0x312   : > { %v2290_v48 = vpop.f32.mrb[7].mxu0 }
 0x314   : > { %v1377_v61 = vpop.f32.mrb[4].mxu1 }
 0x315   : > { %1905 = vrot.lane.b32.xlu0 %v1377_v61, %s2817_s8  ;;  %v2309_v39 = vpop.f32.mrb[5].mxu1 }
 0x316   : > { %v1380_v17 = vpop.f32.mrb[6].mxu1 }
 0x317   : > { %v2310_v31 = vpop.f32.mrb[7].mxu1 }
 0x327   : > { %v1898_v54 = vpop.permute.xlu0 %1897 }
 0x328   : > { %v1925_v7 = vsel %vm1924_vm0, %v3668_v5, %v1898_v54 }
 0x36f   : > { %v1505_v53 = vpop.f32.mrb[8].mxu0 }
 0x370   : > { %1909 = vrot.lane.b32.xlu1 %v1505_v53, %s2818_s13  ;;  %v2329_v34 = vpop.f32.mrb[9].mxu0 }
 0x371   : > { %v1508_v22 = vpop.f32.mrb[10].mxu0 }
 0x372   : > { %v2330_v30 = vpop.f32.mrb[11].mxu0 }
 0x374   : > { %v1633_v4 = vpop.f32.mrb[8].mxu1 }
 0x375   : > { %1913 = vrot.lane.b32.xlu0 %v1633_v4, %s2819_s14  ;;  %v2349_v0 = vpop.f32.mrb[9].mxu1 }
 0x376   : > { %v1636_v55 = vpop.f32.mrb[10].mxu1 }
 0x377   : > { %v2350_v44 = vpop.f32.mrb[11].mxu1 }
 0x382   : > { %v1902_v45 = vpop.permute.xlu1 %1901 }
 0x383   : > { %v1927_v62 = vsel %vm1926_vm2, %v1925_v7, %v1902_v45 }
 0x387   : > { %v1906_v18 = vpop.permute.xlu0 %1905 }
 0x388   : > { %v1929_v49 = vsel %vm1928_vm3, %v1927_v62, %v1906_v18 }
 0x3cf   : > { %v1761_v25 = vpop.f32.mrb[12].mxu0 }
 0x3d0   : > { %1917 = vrot.lane.b32.xlu1 %v1761_v25, %s2820_s22  ;;  %v2369_v38 = vpop.f32.mrb[13].mxu0 }
 0x3d1   : > { %v1764_v14 = vpop.f32.mrb[14].mxu0 }
 0x3d2   : > { %v2370_v2 = vpop.f32.mrb[15].mxu0 }
 0x3d4   : > { %v1889_v33 = vpop.f32.mrb[12].mxu1 }
 0x3d5   : > { %1921 = vrot.lane.b32.xlu0 %v1889_v33, %s2821_s25  ;;  %v2389_v36 = vpop.f32.mrb[13].mxu1 }
 0x3d6   : > { %v1892_v32 = vpop.f32.mrb[14].mxu1 }
 0x3d7   : > { %v2390_v10 = vpop.f32.mrb[15].mxu1 }
 0x3e2   : > { %v1910_v16 = vpop.permute.xlu1 %1909 }
 0x3e3   : > { %v1931_v1 = vsel %vm1930_vm4, %v1929_v49, %v1910_v16 }
 0x3e7   : > { %v1914_v13 = vpop.permute.xlu0 %1913 }
 0x3e8   : > { %v1933_v50 = vsel %vm1932_vm5, %v1931_v1, %v1914_v13 }
 0x442   : > { %v1918_v47 = vpop.permute.xlu1 %1917 }
 0x443   : > { %v1935_v11 = vsel %vm1934_vm6, %v1933_v50, %v1918_v47 }
 0x447   : > { %v1922_v23 = vpop.permute.xlu0 %1921 }
 0x448   : > { %v1937_v56 = vsel %vm1936_vm7, %v1935_v11, %v1922_v23 }
 0x449   : > { %v1938_v42 = vadd.f32 %v1937_v56, %v1895_v51 }
 0x44b   : > { %1939 = vst [vmem:[#allocation2] sm:$0x1f] %v1938_v42 }
 0x44c PF: > { %p2150_p10 = scmp.ne.s32.totalorder %s2776_s29, 1 }
 0x44d   : > { %v1947_v26 = vlaneseq (!%p2150_p10)  ;;  %v2822_v21 = vmov (!%p2150_p10), 0.0  }
 0x44e   : > { %1943 = sbr.rel (%p2150_p10) target bundleno = 1125 (0x465), region = 40 }
 0x44f   : > { %v1948_v52 = vshrl.u32 (!%p2150_p10), %v1947_v26, 7 }
 0x451   : > { %v1949_v28 = vsub.s32 (!%p2150_p10), 4, %v1948_v52 }
 0x452   : > { %v1944_v5 = vld [vmem:[#allocation2] sm:$0x1f] (!%p2150_p10) }
 0x453   : > { %v1945_v41 = vadd.f32 (!%p2150_p10), 1e-08, %v1944_v5  ;;  %vm1953_vm8 = vcmp.gt.f32.partialorder (!%p2150_p10), %v1944_v5, 0.0 }
 0x454   : > { %v2151_v6 = vsel (!%p2150_p10), %vm1953_vm8, 1.0, %v2822_v21 }
 0x455   : > { %2630 = vrcp.f32 %v1945_v41  ;;  %1956 = vst [vmem:[%s352_s15 - $0x4] sm:$0x10] %v2151_v6 }
 0x45f   : > { %v2631_v24 = vpop.eup %2630 }
 0x460   : > { %v1950_v9 = vrot.slane %v2631_v24, %v1949_v28 }
 0x462   : > { %v1951_v57 = vmul.f32 %v1950_v9, %v1944_v5 }
 0x464   : > { %1952 = vst [vmem:[%s2976_s24] sm:$0xf] %v1951_v57 }
 0x465 PF: > { %s2154_s29 = sshll.u32 %s2952_s26, 6  ;;  %s1977_s0 = sshll.u32 %s2976_s24, 4  ;;  %s1978_s0 = int_to_ptr.vmem [resolvable:$true] %s1977_s0 }
 0x466   : > { %s3723_s11 = scalar_lea.hbm %s3807_s4, %s2154_s29  ;;  %s1958_s18 = scalar_lea.sflag [#allocation7], %s2947_s23 }
 0x467   : > { %s2656_s19 = scalar_lea.vmem %s1978_s0, 64  ;;  %s2823_s12 = smov [#allocation6]  }
 0x468   : > { %p2657_p11 = scmp.ne.s32.totalorder %s1978_s0, %s2656_s19  ;;  %s2660_s6 = sshll.u32 %s2823_s12, 4  ;;  %s2661_s6 = int_to_ptr.vmem [resolvable:$false] %s2660_s6 }
 0x469   : > { %s2662_s9 = scalar_lea.vmem %s2661_s6, 128  ;;  %p2663_p0 = scmp.lt.s32.totalorder %s1978_s0, %s2661_s6 }
 0x46a   : > { %p2658_p12 = pnand %p2657_p11, %p2923_p2  ;;  %p2664_p1 = scmp.lt.s32.totalorder %s2662_s9, %s2656_s19 }
 0x46c   : > { %p2659_p13 = pneg %p2658_p12  ;;  %p2665_p4 = por %p2664_p1, %p2663_p0 }
 0x46e   : > { %p2666_p5 = pnand %p2665_p4, %p2659_p13 }
 0x470   : > { %2669 = shalt.err (!%p2666_p5)
}
 0x471   : > { %s2670_s24 = scalar_lea.hbm %s3723_s11, 64  ;;  %s2674_s7 = scalar_lea.hbm %s3807_s4, 256 }
 0x472   : > { %p2671_p6 = scmp.ne.s32.totalorder %s3723_s11, %s2670_s24  ;;  %p2675_p9 = scmp.lt.u32.totalorder %s3723_s11, %s3807_s4 }
 0x473   : > { %p2676_p10 = scmp.lt.u32.totalorder %s2674_s7, %s2670_s24  ;;  %p2678_p12 = scmp.lt.u32.totalorder %s2670_s24, %s3723_s11 }
 0x474   : > { %p2672_p7 = pnand %p2671_p6, %p2923_p2 }
 0x475   : > { %p2677_p11 = por %p2676_p10, %p2675_p9 }
 0x476   : > { %p2673_p8 = pneg %p2672_p7 }
 0x477   : > { %p2679_p13 = por %p2678_p12, %p2677_p11 }
 0x479   : > { %p2680_p0 = pnand %p2679_p13, %p2673_p8 }
 0x47b   : > { %2683 = shalt.err (!%p2680_p0)
}
 0x47c   : > { %2391 = dma.vmem_to_hbm [thread:$0]  (%p2923_p2), %s1978_s0, 64, %s3723_s11, %s1958_s18  }
 0x47d   : > { %s2156_s14 = sshll.u32 %s2952_s26, 4  ;;  %s1992_s22 = sshll.u32 %s352_s15, 4  ;;  %s1993_s22 = int_to_ptr.vmem [resolvable:$true] %s1992_s22 }
 0x47e   : > { %s3750_s20 = scalar_lea.hbm %s3808_s5, %s2156_s14  ;;  %s1963_s21 = scalar_lea.sflag [#allocation9], %s2947_s23 }
 0x47f   : > { %s2684_s19 = scalar_lea.vmem %s1993_s22, 16  ;;  %s2824_s12 = smov [#allocation8]  }
 0x480   : > { %p2685_p1 = scmp.ne.s32.totalorder %s1993_s22, %s2684_s19  ;;  %s2688_s6 = sshll.u32 %s2824_s12, 4  ;;  %s2689_s6 = int_to_ptr.vmem [resolvable:$false] %s2688_s6 }
 0x481   : > { %s2690_s9 = scalar_lea.vmem %s2689_s6, 32  ;;  %p2691_p6 = scmp.lt.s32.totalorder %s1993_s22, %s2689_s6 }
 0x482   : > { %p2686_p4 = pnand %p2685_p1, %p2923_p2  ;;  %p2692_p7 = scmp.lt.s32.totalorder %s2690_s9, %s2684_s19 }
 0x484   : > { %p2687_p5 = pneg %p2686_p4  ;;  %p2693_p8 = por %p2692_p7, %p2691_p6 }
 0x486   : > { %p2694_p9 = pnand %p2693_p8, %p2687_p5 }
 0x488   : > { %2697 = shalt.err (!%p2694_p9)
}
 0x489   : > { %s2698_s23 = scalar_lea.hbm %s3750_s20, 16  ;;  %s2702_s11 = scalar_lea.hbm %s3808_s5, 64 }
 0x48a   : > { %p2699_p10 = scmp.ne.s32.totalorder %s3750_s20, %s2698_s23  ;;  %p2703_p13 = scmp.lt.u32.totalorder %s3750_s20, %s3808_s5 }
 0x48b   : > { %p2704_p0 = scmp.lt.u32.totalorder %s2702_s11, %s2698_s23  ;;  %p2706_p4 = scmp.lt.u32.totalorder %s2698_s23, %s3750_s20 }
 0x48c   : > { %p2700_p11 = pnand %p2699_p10, %p2923_p2 }
 0x48d   : > { %p2705_p1 = por %p2704_p0, %p2703_p13 }
 0x48e   : > { %p2701_p12 = pneg %p2700_p11 }
 0x48f   : > { %p2707_p5 = por %p2706_p4, %p2705_p1 }
 0x491   : > { %p2708_p6 = pnand %p2707_p5, %p2701_p12 }
 0x493   : > { %2711 = shalt.err (!%p2708_p6)
}
 0x494   : > { %2392 = dma.vmem_to_hbm [thread:$0]  (%p2923_p2), %s1993_s22, 16, %s3750_s20, %s1963_s21  }
 0x495 PF: > { %p2402_p7 = scmp.ge.s32.totalorder %s2800_s10, 2  ;;  %s2004_s24 = sand.u32 1, %s2764_s1  }
 0x496   : > { %s2005_s28 = scalar_lea.sflag [#allocation7], %s2004_s24 }
 0x497   : > { %p2396_p8 = pnand %p2402_p7, %p2930_p3 }
 0x499   : > { %2755 = dma.done.wait (!%p2396_p8), %s2005_s28, 64  }
 0x49a   : > { %2757 = vsyncadd (!%p2396_p8), %s2005_s28, 4294967232  ;;  %s2014_s30 = scalar_lea.sflag [#allocation9], %s2004_s24 }
 0x49b   : > { %2759 = dma.done.wait (!%p2396_p8), %s2014_s30, 16  }
 0x49c   : > { %2761 = vsyncadd (!%p2396_p8), %s2014_s30, 4294967280  ;;  %s32_s10 = sadd.s32 1, %s2800_s10   ;;  %s3831_s16 = sld [smem:[#allocation13_spill]] }
 0x49d   : > { %p29_p9 = scmp.ge.s32.totalorder %s32_s10, 10   ;;  %s3832_s28 = sld [smem:[#allocation20_spill]] }
 0x49e   : > { %s3833_s29 = sld [smem:[#allocation14_spill]]  ;;  %s3834_s30 = sld [smem:[#allocation15_spill]] }
 0x49f   : > { %s3835_s6 = sld [smem:[#allocation16_spill]]  ;;  %s3836_s7 = sld [smem:[#allocation17_spill]] }
 0x4a0   : > { %s3837_s8 = sld [smem:[#allocation18_spill]]  ;;  %s3838_s9 = sld [smem:[#allocation19_spill]] }
 0x4a1   : > { %s3839_s1 = smov %s2768_s27  ;;  %31 = sbr.rel (!%p29_p9) target bundleno = 33 (0x21), region = 95 }
 0x4a2   : > { %s3840_s27 = smov %s3831_s16 }
 0x4a8   :  { %2018 = vsyncpa [#allocation7], 1 }
 0x4a9   :  { %2020 = vsyncpa [#allocation7 + $0x1], 1 }
 0x4aa   :  { %2021 = vsyncpa [#allocation9], 1 }
 0x4ab   :  { %2023 = vsyncpa [#allocation9 + $0x1], 1 }

</bundles_post_ra>
